<compile_context>
chip_gen: v6e
topology: v6e:2x2x1
jax: 0.10.0
libtpu: 0.0.40
codegen_flags: <defaults>
</compile_context>

<pallas_src>
import math

import jax
import jax.numpy as jnp
import numpy as np
from jax.experimental import pallas as pl
from jax.experimental.pallas import tpu as pltpu


# --------------------------- fused GRU + GCN kernel --------------------------
def gru_gcn_kernel(x_ref,       # (T*B*N, C)   row t*B*N + b*N + n = step t, batch b, vertex n
                   wi_rz_ref,   # (C, 2H)      input weights for r|z
                   wi_n_ref,    # (C, H)       input weights for n
                   wh_rz_ref,   # (H, 2H)      hidden weights for r|z
                   wh_n_ref,    # (H, H)       hidden weights for n
                   b_rz_ref,    # (1, 2H)      (b_ir|b_iz) + (b_hr|b_hz), pre-summed
                   bi_n_ref,    # (1, H)       b_in
                   bh_n_ref,    # (1, H)       b_hn (must stay inside r*(...))
                   adj_ref,     # (N, N)       sym-normalized adjacency
                   wt_ref,      # (H, C_out)   Theta^T
                   out_ref):    # (B*N, C_out)
    N = adj_ref.shape[0]
    H = wh_n_ref.shape[0]
    BN = out_ref.shape[0]
    B = BN // N
    T = x_ref.shape[0] // BN

    x = x_ref[...]

    # Hoisted input projections for all T steps (one matmul per gate group).
    # All input-side biases + the r/z hidden biases are folded in here once.
    gx_rz_all = jnp.dot(x, wi_rz_ref[...],
                        preferred_element_type=jnp.float32) + b_rz_ref[...]   # (T*BN, 2H)
    gx_n_all = jnp.dot(x, wi_n_ref[...],
                       preferred_element_type=jnp.float32) + bi_n_ref[...]    # (T*BN, H)

    wh_rz = wh_rz_ref[...]
    wh_n = wh_n_ref[...]
    bh_n = jnp.broadcast_to(bh_n_ref[...], (BN, H))   # hoisted broadcast (not per-step)

    # GRU recurrence over all B*N rows at once. T is static -> full unroll,
    # every slice below is a static, sublane-tile-aligned row slab.
    h = jnp.zeros((BN, H), jnp.float32)
    for t in range(T):
        gx_rz = gx_rz_all[t * BN:(t + 1) * BN, :]                            # (BN, 2H)
        gx_n = gx_n_all[t * BN:(t + 1) * BN, :]                              # (BN, H)
        gh_rz = jnp.dot(h, wh_rz, preferred_element_type=jnp.float32)        # (BN, 2H)
        gh_n = jnp.dot(h, wh_n, preferred_element_type=jnp.float32) + bh_n   # (BN, H)
        s = jax.nn.sigmoid(gx_rz + gh_rz)        # one fused sigmoid for r and z
        r = s[:, 0:H]                            # leading lanes, no shift
        z = s[:, H:2 * H]                        # off the r->tanh critical path
        n = jnp.tanh(gx_n + r * gh_n)
        h = n + z * (h - n)                      # == (1-z)*n + z*h

    # Fused GCN epilogue on the resident last hidden state, reassociated:
    # relu(A @ (h @ Theta)) == relu((A @ h) @ Theta), fewer FLOPs.
    hw = jnp.dot(h, wt_ref[...], preferred_element_type=jnp.float32)         # (BN, C_out)
    adj = adj_ref[...]
    for b in range(B):   # adjacency only mixes vertices within one batch
        yb = jnp.dot(adj, hw[b * N:(b + 1) * N, :],
                     preferred_element_type=jnp.float32)                     # (N, C_out)
        out_ref[b * N:(b + 1) * N, :] = jnp.maximum(yb, 0.0).astype(out_ref.dtype)


# ------------------------------ module forward -------------------------------
def gru_gcn_unit_forward(x, adj, params):
    # x: (B, N, T, C_in)
    B, N, T, C = x.shape
    H = params["hidden_size"]
    C_out = params["w_theta_t"].shape[1]

    # (B, N, T, C) -> (T, B, N, C) -> (T*B*N, C): each timestep is one
    # contiguous, tile-aligned slab of B*N rows (batch-major, vertex-minor),
    # matching the layout of the resident hidden state h.
    x_arr = jnp.transpose(x, (2, 0, 1, 3)).reshape(T * B * N, C)

    out = pl.pallas_call(
        gru_gcn_kernel,
        out_shape=jax.ShapeDtypeStruct((B * N, C_out), jnp.float32),
        grid_spec=pltpu.PrefetchScalarGridSpec(
            num_scalar_prefetch=0,
            grid=(1,),   # single step: whole problem fits VMEM many times over
            in_specs=[
                pl.BlockSpec((T * B * N, C), lambda i: (0, 0)),
                pl.BlockSpec((C, 2 * H), lambda i: (0, 0)),
                pl.BlockSpec((C, H), lambda i: (0, 0)),
                pl.BlockSpec((H, 2 * H), lambda i: (0, 0)),
                pl.BlockSpec((H, H), lambda i: (0, 0)),
                pl.BlockSpec((1, 2 * H), lambda i: (0, 0)),
                pl.BlockSpec((1, H), lambda i: (0, 0)),
                pl.BlockSpec((1, H), lambda i: (0, 0)),
                pl.BlockSpec((N, N), lambda i: (0, 0)),
                pl.BlockSpec((H, C_out), lambda i: (0, 0)),
            ],
            out_specs=pl.BlockSpec((B * N, C_out), lambda i: (0, 0)),
        ),
        compiler_params=pltpu.CompilerParams(
            dimension_semantics=("arbitrary",)),
    )(x_arr, params["wi_rz"], params["wi_n"], params["wh_rz"], params["wh_n"],
      params["b_rz"], params["bi_n"], params["bh_n"], adj, params["w_theta_t"])

    # Matches torch .squeeze() (note: drops every size-1 dim if N/C_out==1).
    return jnp.squeeze(out.reshape(B, N, C_out))


# ----------------------------- pure-JAX reference ----------------------------
def reference_forward(x, adj, params):
    # Fully faithful: full GRU output, GCN over every timestep, then slice last.
    B, N, T, C = x.shape
    H = params["hidden_size"]
    wi = params["W_ih"].T      # (C, 3H), gate order r|z|n
    wh = params["W_hh"].T      # (H, 3H)
    bi = params["b_ih"]
    bh = params["b_hh"]
    wt = params["w_theta_t"]

    xs = x.reshape(B * N, T, C)
    h = jnp.zeros((B * N, H), jnp.float32)
    hs = []
    for t in range(T):
        gx = xs[:, t, :] @ wi + bi
        gh = h @ wh + bh
        r = jax.nn.sigmoid(gx[:, :H] + gh[:, :H])
        z = jax.nn.sigmoid(gx[:, H:2 * H] + gh[:, H:2 * H])
        n = jnp.tanh(gx[:, 2 * H:] + r * gh[:, 2 * H:])
        h = (1.0 - z) * n + z * h
        hs.append(h)
    gru_out = jnp.stack(hs, axis=1).reshape(B, N, T, H)                 # (B,N,T,H)
    g = jnp.transpose(gru_out, (0, 2, 1, 3)).reshape(B * T, N, H)       # (B*T,N,H)
    y = jnp.einsum("nm,bmh->bnh", adj, g)
    o = jax.nn.relu(jnp.einsum("bnh,hc->bnc", y, wt))
    o = jnp.transpose(o.reshape(B, T, N, -1), (0, 2, 1, 3))             # (B,N,T,Cout)
    return jnp.squeeze(o[:, :, -1, :])


# ------------------------------- setup / main --------------------------------
def make_params(key, in_channels, hidden_size, out_channels):
    H = hidden_size
    k = jax.random.split(key, 5)
    bound = 1.0 / math.sqrt(H)
    # PyTorch nn.GRU packed weights, gate order r, z, n along dim 0.
    W_ih = jax.random.uniform(k[0], (3 * H, in_channels), jnp.float32, -bound, bound)
    W_hh = jax.random.uniform(k[1], (3 * H, H), jnp.float32, -bound, bound)
    b_ih = jax.random.uniform(k[2], (3 * H,), jnp.float32, -bound, bound)
    b_hh = jax.random.uniform(k[3], (3 * H,), jnp.float32, -bound, bound)
    # Theta: nn.Linear(hidden_size, out_channels, bias=False) -> weight (C_out, H)
    W_theta = jax.random.uniform(k[4], (out_channels, H), jnp.float32, -bound, bound)
    return dict(
        hidden_size=H,
        # packed (for the faithful reference)
        W_ih=W_ih, W_hh=W_hh, b_ih=b_ih, b_hh=b_hh,
        # kernel layout: r/z group + n group, biases pre-folded where legal
        wi_rz=W_ih[:2 * H].T,                          # (C_in, 2H)
        wi_n=W_ih[2 * H:].T,                           # (C_in, H)
        wh_rz=W_hh[:2 * H].T,                          # (H, 2H)
        wh_n=W_hh[2 * H:].T,                           # (H, H)
        b_rz=(b_ih[:2 * H] + b_hh[:2 * H]).reshape(1, 2 * H),
        bi_n=b_ih[2 * H:].reshape(1, H),
        bh_n=b_hh[2 * H:].reshape(1, H),
        w_theta_t=W_theta.T,                           # (H, C_out)
    )


def make_sym_norm_adj(key, N):
    A = (jax.random.uniform(key, (N, N)) > 0.6).astype(jnp.float32)
    A = jnp.minimum(jnp.maximum(A, A.T) + jnp.eye(N, dtype=jnp.float32), 1.0)
    d_inv_sqrt = 1.0 / jnp.sqrt(A.sum(axis=1))
    return d_inv_sqrt[:, None] * A * d_inv_sqrt[None, :]


if __name__ == "__main__":
    B, N, T, C_in = 2, 16, 8, 4
    H, C_out = 32, 8

    key = jax.random.PRNGKey(0)
    k_x, k_adj, k_p = jax.random.split(key, 3)

    x = jax.random.normal(k_x, (B, N, T, C_in), jnp.float32)
    adj = make_sym_norm_adj(k_adj, N)
    params = make_params(k_p, C_in, H, C_out)

    out = gru_gcn_unit_forward(x, adj, params)
    out = jax.block_until_ready(out)

    ref = reference_forward(x, adj, params)
    np.testing.assert_allclose(np.asarray(out), np.asarray(ref), rtol=2e-5, atol=2e-5)

    print("KERNEL_OK")
</pallas_src>

<mosaic_0001>
module attributes {stable_mosaic.version = 11 : i64} {
  func.func @gru_gcn_kernel(%arg0: i32, %arg1: memref<256x4xf32, #tpu.memory_space<vmem>>, %arg2: memref<4x64xf32, #tpu.memory_space<vmem>>, %arg3: memref<4x32xf32, #tpu.memory_space<vmem>>, %arg4: memref<32x64xf32, #tpu.memory_space<vmem>>, %arg5: memref<32x32xf32, #tpu.memory_space<vmem>>, %arg6: memref<1x64xf32, #tpu.memory_space<vmem>>, %arg7: memref<1x32xf32, #tpu.memory_space<vmem>>, %arg8: memref<1x32xf32, #tpu.memory_space<vmem>>, %arg9: memref<16x16xf32, #tpu.memory_space<vmem>>, %arg10: memref<32x8xf32, #tpu.memory_space<vmem>>, %arg11: memref<32x8xf32, #tpu.memory_space<vmem>>) attributes {dimension_semantics = [#tpu.dimension_semantics<arbitrary>], iteration_bounds = array<i64: 1>, scalar_prefetch = 0 : i64, scratch_operands = 0 : i64, tpu.core_type = #tpu.core_type<tc>, window_params = [{pipeline_mode = #tpu.pipeline_mode<synchronous>, transform_indices = @transform_0, window_bounds = array<i64: 256, 4>}, {pipeline_mode = #tpu.pipeline_mode<synchronous>, transform_indices = @transform_1, window_bounds = array<i64: 4, 64>}, {pipeline_mode = #tpu.pipeline_mode<synchronous>, transform_indices = @transform_2, window_bounds = array<i64: 4, 32>}, {pipeline_mode = #tpu.pipeline_mode<synchronous>, transform_indices = @transform_3, window_bounds = array<i64: 32, 64>}, {pipeline_mode = #tpu.pipeline_mode<synchronous>, transform_indices = @transform_4, window_bounds = array<i64: 32, 32>}, {pipeline_mode = #tpu.pipeline_mode<synchronous>, transform_indices = @transform_5, window_bounds = array<i64: 1, 64>}, {pipeline_mode = #tpu.pipeline_mode<synchronous>, transform_indices = @transform_6, window_bounds = array<i64: 1, 32>}, {pipeline_mode = #tpu.pipeline_mode<synchronous>, transform_indices = @transform_7, window_bounds = array<i64: 1, 32>}, {pipeline_mode = #tpu.pipeline_mode<synchronous>, transform_indices = @transform_8, window_bounds = array<i64: 16, 16>}, {pipeline_mode = #tpu.pipeline_mode<synchronous>, transform_indices = @transform_9, window_bounds = array<i64: 32, 8>}, {pipeline_mode = #tpu.pipeline_mode<synchronous>, transform_indices = @transform_10, window_bounds = array<i64: 32, 8>}]} {
    %c0 = arith.constant 0 : index
    %c0_0 = arith.constant 0 : index
    %0 = vector.load %arg1[%c0, %c0_0] : memref<256x4xf32, #tpu.memory_space<vmem>>, vector<256x4xf32>
    %c0_1 = arith.constant 0 : index
    %c0_2 = arith.constant 0 : index
    %1 = vector.load %arg2[%c0_1, %c0_2] : memref<4x64xf32, #tpu.memory_space<vmem>>, vector<4x64xf32>
    %cst = arith.constant dense<0.000000e+00> : vector<256x64xf32>
    %2 = tpu.matmul %0, %1, %cst {dimension_numbers = #tpu.dot_dimension_numbers<[1], [0], [0], [1], [0, 0, 1, 1], [], []>} : vector<256x4xf32>, vector<4x64xf32>, vector<256x64xf32> -> vector<256x64xf32>
    %c0_3 = arith.constant 0 : index
    %c0_4 = arith.constant 0 : index
    %3 = vector.load %arg6[%c0_3, %c0_4] : memref<1x64xf32, #tpu.memory_space<vmem>>, vector<1x64xf32>
    %4 = vector.broadcast %3 : vector<1x64xf32> to vector<256x64xf32>
    %5 = arith.addf %2, %4 : vector<256x64xf32>
    %c0_5 = arith.constant 0 : index
    %c0_6 = arith.constant 0 : index
    %6 = vector.load %arg3[%c0_5, %c0_6] : memref<4x32xf32, #tpu.memory_space<vmem>>, vector<4x32xf32>
    %cst_7 = arith.constant dense<0.000000e+00> : vector<256x32xf32>
    %7 = tpu.matmul %0, %6, %cst_7 {dimension_numbers = #tpu.dot_dimension_numbers<[1], [0], [0], [1], [0, 0, 1, 1], [], []>} : vector<256x4xf32>, vector<4x32xf32>, vector<256x32xf32> -> vector<256x32xf32>
    %c0_8 = arith.constant 0 : index
    %c0_9 = arith.constant 0 : index
    %8 = vector.load %arg7[%c0_8, %c0_9] : memref<1x32xf32, #tpu.memory_space<vmem>>, vector<1x32xf32>
    %9 = vector.broadcast %8 : vector<1x32xf32> to vector<256x32xf32>
    %10 = arith.addf %7, %9 : vector<256x32xf32>
    %c0_10 = arith.constant 0 : index
    %c0_11 = arith.constant 0 : index
    %11 = vector.load %arg4[%c0_10, %c0_11] : memref<32x64xf32, #tpu.memory_space<vmem>>, vector<32x64xf32>
    %c0_12 = arith.constant 0 : index
    %c0_13 = arith.constant 0 : index
    %12 = vector.load %arg5[%c0_12, %c0_13] : memref<32x32xf32, #tpu.memory_space<vmem>>, vector<32x32xf32>
    %c0_14 = arith.constant 0 : index
    %c0_15 = arith.constant 0 : index
    %13 = vector.load %arg8[%c0_14, %c0_15] : memref<1x32xf32, #tpu.memory_space<vmem>>, vector<1x32xf32>
    %14 = vector.shape_cast %13 : vector<1x32xf32> to vector<1x32xf32>
    %15 = vector.broadcast %14 : vector<1x32xf32> to vector<32x32xf32>
    %cst_16 = arith.constant 0.000000e+00 : f32
    %16 = vector.broadcast %cst_16 : f32 to vector<32x32xf32>
    %17 = vector.extract_strided_slice %5 {offsets = [0, 0], sizes = [32, 64], strides = [1, 1]} : vector<256x64xf32> to vector<32x64xf32>
    %18 = vector.extract_strided_slice %10 {offsets = [0, 0], sizes = [32, 32], strides = [1, 1]} : vector<256x32xf32> to vector<32x32xf32>
    %cst_17 = arith.constant dense<0.000000e+00> : vector<32x64xf32>
    %19 = tpu.matmul %16, %11, %cst_17 {dimension_numbers = #tpu.dot_dimension_numbers<[1], [0], [0], [1], [0, 0, 1, 1], [], []>} : vector<32x32xf32>, vector<32x64xf32>, vector<32x64xf32> -> vector<32x64xf32>
    %cst_18 = arith.constant dense<0.000000e+00> : vector<32x32xf32>
    %20 = tpu.matmul %16, %12, %cst_18 {dimension_numbers = #tpu.dot_dimension_numbers<[1], [0], [0], [1], [0, 0, 1, 1], [], []>} : vector<32x32xf32>, vector<32x32xf32>, vector<32x32xf32> -> vector<32x32xf32>
    %21 = arith.addf %20, %15 : vector<32x32xf32>
    %22 = arith.addf %17, %19 : vector<32x64xf32>
    %23 = arith.negf %22 : vector<32x64xf32>
    %24 = math.exp %23 : vector<32x64xf32>
    %cst_19 = arith.constant 1.000000e+00 : f32
    %25 = vector.broadcast %cst_19 : f32 to vector<32x64xf32>
    %26 = arith.addf %25, %24 : vector<32x64xf32>
    %27 = arith.divf %25, %26 : vector<32x64xf32>
    %28 = vector.extract_strided_slice %27 {offsets = [0, 0], sizes = [32, 32], strides = [1, 1]} : vector<32x64xf32> to vector<32x32xf32>
    %29 = vector.extract_strided_slice %27 {offsets = [0, 32], sizes = [32, 32], strides = [1, 1]} : vector<32x64xf32> to vector<32x32xf32>
    %30 = arith.mulf %28, %21 : vector<32x32xf32>
    %31 = arith.addf %18, %30 : vector<32x32xf32>
    %32 = math.tanh %31 : vector<32x32xf32>
    %33 = arith.subf %16, %32 : vector<32x32xf32>
    %34 = arith.mulf %29, %33 : vector<32x32xf32>
    %35 = arith.addf %32, %34 : vector<32x32xf32>
    %36 = vector.extract_strided_slice %5 {offsets = [32, 0], sizes = [32, 64], strides = [1, 1]} : vector<256x64xf32> to vector<32x64xf32>
    %37 = vector.extract_strided_slice %10 {offsets = [32, 0], sizes = [32, 32], strides = [1, 1]} : vector<256x32xf32> to vector<32x32xf32>
    %cst_20 = arith.constant dense<0.000000e+00> : vector<32x64xf32>
    %38 = tpu.matmul %35, %11, %cst_20 {dimension_numbers = #tpu.dot_dimension_numbers<[1], [0], [0], [1], [0, 0, 1, 1], [], []>} : vector<32x32xf32>, vector<32x64xf32>, vector<32x64xf32> -> vector<32x64xf32>
    %cst_21 = arith.constant dense<0.000000e+00> : vector<32x32xf32>
    %39 = tpu.matmul %35, %12, %cst_21 {dimension_numbers = #tpu.dot_dimension_numbers<[1], [0], [0], [1], [0, 0, 1, 1], [], []>} : vector<32x32xf32>, vector<32x32xf32>, vector<32x32xf32> -> vector<32x32xf32>
    %40 = arith.addf %39, %15 : vector<32x32xf32>
    %41 = arith.addf %36, %38 : vector<32x64xf32>
    %42 = arith.negf %41 : vector<32x64xf32>
    %43 = math.exp %42 : vector<32x64xf32>
    %cst_22 = arith.constant 1.000000e+00 : f32
    %44 = vector.broadcast %cst_22 : f32 to vector<32x64xf32>
    %45 = arith.addf %44, %43 : vector<32x64xf32>
    %46 = arith.divf %44, %45 : vector<32x64xf32>
    %47 = vector.extract_strided_slice %46 {offsets = [0, 0], sizes = [32, 32], strides = [1, 1]} : vector<32x64xf32> to vector<32x32xf32>
    %48 = vector.extract_strided_slice %46 {offsets = [0, 32], sizes = [32, 32], strides = [1, 1]} : vector<32x64xf32> to vector<32x32xf32>
    %49 = arith.mulf %47, %40 : vector<32x32xf32>
    %50 = arith.addf %37, %49 : vector<32x32xf32>
    %51 = math.tanh %50 : vector<32x32xf32>
    %52 = arith.subf %35, %51 : vector<32x32xf32>
    %53 = arith.mulf %48, %52 : vector<32x32xf32>
    %54 = arith.addf %51, %53 : vector<32x32xf32>
    %55 = vector.extract_strided_slice %5 {offsets = [64, 0], sizes = [32, 64], strides = [1, 1]} : vector<256x64xf32> to vector<32x64xf32>
    %56 = vector.extract_strided_slice %10 {offsets = [64, 0], sizes = [32, 32], strides = [1, 1]} : vector<256x32xf32> to vector<32x32xf32>
    %cst_23 = arith.constant dense<0.000000e+00> : vector<32x64xf32>
    %57 = tpu.matmul %54, %11, %cst_23 {dimension_numbers = #tpu.dot_dimension_numbers<[1], [0], [0], [1], [0, 0, 1, 1], [], []>} : vector<32x32xf32>, vector<32x64xf32>, vector<32x64xf32> -> vector<32x64xf32>
    %cst_24 = arith.constant dense<0.000000e+00> : vector<32x32xf32>
    %58 = tpu.matmul %54, %12, %cst_24 {dimension_numbers = #tpu.dot_dimension_numbers<[1], [0], [0], [1], [0, 0, 1, 1], [], []>} : vector<32x32xf32>, vector<32x32xf32>, vector<32x32xf32> -> vector<32x32xf32>
    %59 = arith.addf %58, %15 : vector<32x32xf32>
    %60 = arith.addf %55, %57 : vector<32x64xf32>
    %61 = arith.negf %60 : vector<32x64xf32>
    %62 = math.exp %61 : vector<32x64xf32>
    %cst_25 = arith.constant 1.000000e+00 : f32
    %63 = vector.broadcast %cst_25 : f32 to vector<32x64xf32>
    %64 = arith.addf %63, %62 : vector<32x64xf32>
    %65 = arith.divf %63, %64 : vector<32x64xf32>
    %66 = vector.extract_strided_slice %65 {offsets = [0, 0], sizes = [32, 32], strides = [1, 1]} : vector<32x64xf32> to vector<32x32xf32>
    %67 = vector.extract_strided_slice %65 {offsets = [0, 32], sizes = [32, 32], strides = [1, 1]} : vector<32x64xf32> to vector<32x32xf32>
    %68 = arith.mulf %66, %59 : vector<32x32xf32>
    %69 = arith.addf %56, %68 : vector<32x32xf32>
    %70 = math.tanh %69 : vector<32x32xf32>
    %71 = arith.subf %54, %70 : vector<32x32xf32>
    %72 = arith.mulf %67, %71 : vector<32x32xf32>
    %73 = arith.addf %70, %72 : vector<32x32xf32>
    %74 = vector.extract_strided_slice %5 {offsets = [96, 0], sizes = [32, 64], strides = [1, 1]} : vector<256x64xf32> to vector<32x64xf32>
    %75 = vector.extract_strided_slice %10 {offsets = [96, 0], sizes = [32, 32], strides = [1, 1]} : vector<256x32xf32> to vector<32x32xf32>
    %cst_26 = arith.constant dense<0.000000e+00> : vector<32x64xf32>
    %76 = tpu.matmul %73, %11, %cst_26 {dimension_numbers = #tpu.dot_dimension_numbers<[1], [0], [0], [1], [0, 0, 1, 1], [], []>} : vector<32x32xf32>, vector<32x64xf32>, vector<32x64xf32> -> vector<32x64xf32>
    %cst_27 = arith.constant dense<0.000000e+00> : vector<32x32xf32>
    %77 = tpu.matmul %73, %12, %cst_27 {dimension_numbers = #tpu.dot_dimension_numbers<[1], [0], [0], [1], [0, 0, 1, 1], [], []>} : vector<32x32xf32>, vector<32x32xf32>, vector<32x32xf32> -> vector<32x32xf32>
    %78 = arith.addf %77, %15 : vector<32x32xf32>
    %79 = arith.addf %74, %76 : vector<32x64xf32>
    %80 = arith.negf %79 : vector<32x64xf32>
    %81 = math.exp %80 : vector<32x64xf32>
    %cst_28 = arith.constant 1.000000e+00 : f32
    %82 = vector.broadcast %cst_28 : f32 to vector<32x64xf32>
    %83 = arith.addf %82, %81 : vector<32x64xf32>
    %84 = arith.divf %82, %83 : vector<32x64xf32>
    %85 = vector.extract_strided_slice %84 {offsets = [0, 0], sizes = [32, 32], strides = [1, 1]} : vector<32x64xf32> to vector<32x32xf32>
    %86 = vector.extract_strided_slice %84 {offsets = [0, 32], sizes = [32, 32], strides = [1, 1]} : vector<32x64xf32> to vector<32x32xf32>
    %87 = arith.mulf %85, %78 : vector<32x32xf32>
    %88 = arith.addf %75, %87 : vector<32x32xf32>
    %89 = math.tanh %88 : vector<32x32xf32>
    %90 = arith.subf %73, %89 : vector<32x32xf32>
    %91 = arith.mulf %86, %90 : vector<32x32xf32>
    %92 = arith.addf %89, %91 : vector<32x32xf32>
    %93 = vector.extract_strided_slice %5 {offsets = [128, 0], sizes = [32, 64], strides = [1, 1]} : vector<256x64xf32> to vector<32x64xf32>
    %94 = vector.extract_strided_slice %10 {offsets = [128, 0], sizes = [32, 32], strides = [1, 1]} : vector<256x32xf32> to vector<32x32xf32>
    %cst_29 = arith.constant dense<0.000000e+00> : vector<32x64xf32>
    %95 = tpu.matmul %92, %11, %cst_29 {dimension_numbers = #tpu.dot_dimension_numbers<[1], [0], [0], [1], [0, 0, 1, 1], [], []>} : vector<32x32xf32>, vector<32x64xf32>, vector<32x64xf32> -> vector<32x64xf32>
    %cst_30 = arith.constant dense<0.000000e+00> : vector<32x32xf32>
    %96 = tpu.matmul %92, %12, %cst_30 {dimension_numbers = #tpu.dot_dimension_numbers<[1], [0], [0], [1], [0, 0, 1, 1], [], []>} : vector<32x32xf32>, vector<32x32xf32>, vector<32x32xf32> -> vector<32x32xf32>
    %97 = arith.addf %96, %15 : vector<32x32xf32>
    %98 = arith.addf %93, %95 : vector<32x64xf32>
    %99 = arith.negf %98 : vector<32x64xf32>
    %100 = math.exp %99 : vector<32x64xf32>
    %cst_31 = arith.constant 1.000000e+00 : f32
    %101 = vector.broadcast %cst_31 : f32 to vector<32x64xf32>
    %102 = arith.addf %101, %100 : vector<32x64xf32>
    %103 = arith.divf %101, %102 : vector<32x64xf32>
    %104 = vector.extract_strided_slice %103 {offsets = [0, 0], sizes = [32, 32], strides = [1, 1]} : vector<32x64xf32> to vector<32x32xf32>
    %105 = vector.extract_strided_slice %103 {offsets = [0, 32], sizes = [32, 32], strides = [1, 1]} : vector<32x64xf32> to vector<32x32xf32>
    %106 = arith.mulf %104, %97 : vector<32x32xf32>
    %107 = arith.addf %94, %106 : vector<32x32xf32>
    %108 = math.tanh %107 : vector<32x32xf32>
    %109 = arith.subf %92, %108 : vector<32x32xf32>
    %110 = arith.mulf %105, %109 : vector<32x32xf32>
    %111 = arith.addf %108, %110 : vector<32x32xf32>
    %112 = vector.extract_strided_slice %5 {offsets = [160, 0], sizes = [32, 64], strides = [1, 1]} : vector<256x64xf32> to vector<32x64xf32>
    %113 = vector.extract_strided_slice %10 {offsets = [160, 0], sizes = [32, 32], strides = [1, 1]} : vector<256x32xf32> to vector<32x32xf32>
    %cst_32 = arith.constant dense<0.000000e+00> : vector<32x64xf32>
    %114 = tpu.matmul %111, %11, %cst_32 {dimension_numbers = #tpu.dot_dimension_numbers<[1], [0], [0], [1], [0, 0, 1, 1], [], []>} : vector<32x32xf32>, vector<32x64xf32>, vector<32x64xf32> -> vector<32x64xf32>
    %cst_33 = arith.constant dense<0.000000e+00> : vector<32x32xf32>
    %115 = tpu.matmul %111, %12, %cst_33 {dimension_numbers = #tpu.dot_dimension_numbers<[1], [0], [0], [1], [0, 0, 1, 1], [], []>} : vector<32x32xf32>, vector<32x32xf32>, vector<32x32xf32> -> vector<32x32xf32>
    %116 = arith.addf %115, %15 : vector<32x32xf32>
    %117 = arith.addf %112, %114 : vector<32x64xf32>
    %118 = arith.negf %117 : vector<32x64xf32>
    %119 = math.exp %118 : vector<32x64xf32>
    %cst_34 = arith.constant 1.000000e+00 : f32
    %120 = vector.broadcast %cst_34 : f32 to vector<32x64xf32>
    %121 = arith.addf %120, %119 : vector<32x64xf32>
    %122 = arith.divf %120, %121 : vector<32x64xf32>
    %123 = vector.extract_strided_slice %122 {offsets = [0, 0], sizes = [32, 32], strides = [1, 1]} : vector<32x64xf32> to vector<32x32xf32>
    %124 = vector.extract_strided_slice %122 {offsets = [0, 32], sizes = [32, 32], strides = [1, 1]} : vector<32x64xf32> to vector<32x32xf32>
    %125 = arith.mulf %123, %116 : vector<32x32xf32>
    %126 = arith.addf %113, %125 : vector<32x32xf32>
    %127 = math.tanh %126 : vector<32x32xf32>
    %128 = arith.subf %111, %127 : vector<32x32xf32>
    %129 = arith.mulf %124, %128 : vector<32x32xf32>
    %130 = arith.addf %127, %129 : vector<32x32xf32>
    %131 = vector.extract_strided_slice %5 {offsets = [192, 0], sizes = [32, 64], strides = [1, 1]} : vector<256x64xf32> to vector<32x64xf32>
    %132 = vector.extract_strided_slice %10 {offsets = [192, 0], sizes = [32, 32], strides = [1, 1]} : vector<256x32xf32> to vector<32x32xf32>
    %cst_35 = arith.constant dense<0.000000e+00> : vector<32x64xf32>
    %133 = tpu.matmul %130, %11, %cst_35 {dimension_numbers = #tpu.dot_dimension_numbers<[1], [0], [0], [1], [0, 0, 1, 1], [], []>} : vector<32x32xf32>, vector<32x64xf32>, vector<32x64xf32> -> vector<32x64xf32>
    %cst_36 = arith.constant dense<0.000000e+00> : vector<32x32xf32>
    %134 = tpu.matmul %130, %12, %cst_36 {dimension_numbers = #tpu.dot_dimension_numbers<[1], [0], [0], [1], [0, 0, 1, 1], [], []>} : vector<32x32xf32>, vector<32x32xf32>, vector<32x32xf32> -> vector<32x32xf32>
    %135 = arith.addf %134, %15 : vector<32x32xf32>
    %136 = arith.addf %131, %133 : vector<32x64xf32>
    %137 = arith.negf %136 : vector<32x64xf32>
    %138 = math.exp %137 : vector<32x64xf32>
    %cst_37 = arith.constant 1.000000e+00 : f32
    %139 = vector.broadcast %cst_37 : f32 to vector<32x64xf32>
    %140 = arith.addf %139, %138 : vector<32x64xf32>
    %141 = arith.divf %139, %140 : vector<32x64xf32>
    %142 = vector.extract_strided_slice %141 {offsets = [0, 0], sizes = [32, 32], strides = [1, 1]} : vector<32x64xf32> to vector<32x32xf32>
    %143 = vector.extract_strided_slice %141 {offsets = [0, 32], sizes = [32, 32], strides = [1, 1]} : vector<32x64xf32> to vector<32x32xf32>
    %144 = arith.mulf %142, %135 : vector<32x32xf32>
    %145 = arith.addf %132, %144 : vector<32x32xf32>
    %146 = math.tanh %145 : vector<32x32xf32>
    %147 = arith.subf %130, %146 : vector<32x32xf32>
    %148 = arith.mulf %143, %147 : vector<32x32xf32>
    %149 = arith.addf %146, %148 : vector<32x32xf32>
    %150 = vector.extract_strided_slice %5 {offsets = [224, 0], sizes = [32, 64], strides = [1, 1]} : vector<256x64xf32> to vector<32x64xf32>
    %151 = vector.extract_strided_slice %10 {offsets = [224, 0], sizes = [32, 32], strides = [1, 1]} : vector<256x32xf32> to vector<32x32xf32>
    %cst_38 = arith.constant dense<0.000000e+00> : vector<32x64xf32>
    %152 = tpu.matmul %149, %11, %cst_38 {dimension_numbers = #tpu.dot_dimension_numbers<[1], [0], [0], [1], [0, 0, 1, 1], [], []>} : vector<32x32xf32>, vector<32x64xf32>, vector<32x64xf32> -> vector<32x64xf32>
    %cst_39 = arith.constant dense<0.000000e+00> : vector<32x32xf32>
    %153 = tpu.matmul %149, %12, %cst_39 {dimension_numbers = #tpu.dot_dimension_numbers<[1], [0], [0], [1], [0, 0, 1, 1], [], []>} : vector<32x32xf32>, vector<32x32xf32>, vector<32x32xf32> -> vector<32x32xf32>
    %154 = arith.addf %153, %15 : vector<32x32xf32>
    %155 = arith.addf %150, %152 : vector<32x64xf32>
    %156 = arith.negf %155 : vector<32x64xf32>
    %157 = math.exp %156 : vector<32x64xf32>
    %cst_40 = arith.constant 1.000000e+00 : f32
    %158 = vector.broadcast %cst_40 : f32 to vector<32x64xf32>
    %159 = arith.addf %158, %157 : vector<32x64xf32>
    %160 = arith.divf %158, %159 : vector<32x64xf32>
    %161 = vector.extract_strided_slice %160 {offsets = [0, 0], sizes = [32, 32], strides = [1, 1]} : vector<32x64xf32> to vector<32x32xf32>
    %162 = vector.extract_strided_slice %160 {offsets = [0, 32], sizes = [32, 32], strides = [1, 1]} : vector<32x64xf32> to vector<32x32xf32>
    %163 = arith.mulf %161, %154 : vector<32x32xf32>
    %164 = arith.addf %151, %163 : vector<32x32xf32>
    %165 = math.tanh %164 : vector<32x32xf32>
    %166 = arith.subf %149, %165 : vector<32x32xf32>
    %167 = arith.mulf %162, %166 : vector<32x32xf32>
    %168 = arith.addf %165, %167 : vector<32x32xf32>
    %c0_41 = arith.constant 0 : index
    %c0_42 = arith.constant 0 : index
    %169 = vector.load %arg10[%c0_41, %c0_42] : memref<32x8xf32, #tpu.memory_space<vmem>>, vector<32x8xf32>
    %cst_43 = arith.constant dense<0.000000e+00> : vector<32x8xf32>
    %170 = tpu.matmul %168, %169, %cst_43 {dimension_numbers = #tpu.dot_dimension_numbers<[1], [0], [0], [1], [0, 0, 1, 1], [], []>} : vector<32x32xf32>, vector<32x8xf32>, vector<32x8xf32> -> vector<32x8xf32>
    %c0_44 = arith.constant 0 : index
    %c0_45 = arith.constant 0 : index
    %171 = vector.load %arg9[%c0_44, %c0_45] : memref<16x16xf32, #tpu.memory_space<vmem>>, vector<16x16xf32>
    %172 = vector.extract_strided_slice %170 {offsets = [0, 0], sizes = [16, 8], strides = [1, 1]} : vector<32x8xf32> to vector<16x8xf32>
    %cst_46 = arith.constant dense<0.000000e+00> : vector<16x8xf32>
    %173 = tpu.matmul %171, %172, %cst_46 {dimension_numbers = #tpu.dot_dimension_numbers<[1], [0], [0], [1], [0, 0, 1, 1], [], []>} : vector<16x16xf32>, vector<16x8xf32>, vector<16x8xf32> -> vector<16x8xf32>
    %cst_47 = arith.constant 0.000000e+00 : f32
    %174 = vector.broadcast %cst_47 : f32 to vector<16x8xf32>
    %175 = arith.maximumf %173, %174 : vector<16x8xf32>
    %c0_48 = arith.constant 0 : index
    %c0_49 = arith.constant 0 : index
    %176 = vector.load %arg11[%c0_48, %c0_49] : memref<32x8xf32, #tpu.memory_space<vmem>>, vector<16x8xf32>
    tpu.vector_store %arg11[%c0_48, %c0_49], %175 {strides = array<i32>} : memref<32x8xf32, #tpu.memory_space<vmem>>, vector<16x8xf32>,
    %177 = vector.extract_strided_slice %170 {offsets = [16, 0], sizes = [16, 8], strides = [1, 1]} : vector<32x8xf32> to vector<16x8xf32>
    %cst_50 = arith.constant dense<0.000000e+00> : vector<16x8xf32>
    %178 = tpu.matmul %171, %177, %cst_50 {dimension_numbers = #tpu.dot_dimension_numbers<[1], [0], [0], [1], [0, 0, 1, 1], [], []>} : vector<16x16xf32>, vector<16x8xf32>, vector<16x8xf32> -> vector<16x8xf32>
    %cst_51 = arith.constant 0.000000e+00 : f32
    %179 = vector.broadcast %cst_51 : f32 to vector<16x8xf32>
    %180 = arith.maximumf %178, %179 : vector<16x8xf32>
    %c16 = arith.constant 16 : index
    %c0_52 = arith.constant 0 : index
    %181 = vector.load %arg11[%c16, %c0_52] : memref<32x8xf32, #tpu.memory_space<vmem>>, vector<16x8xf32>
    tpu.vector_store %arg11[%c16, %c0_52], %180 {strides = array<i32>} : memref<32x8xf32, #tpu.memory_space<vmem>>, vector<16x8xf32>,
    return
  }
  func.func @transform_0(%arg0: i32) -> (i32, i32) {
    %c0_i32 = arith.constant 0 : i32
    %c0_i32_0 = arith.constant 0 : i32
    %c0_i32_1 = arith.constant 0 : i32
    return %c0_i32, %c0_i32_0 : i32, i32
  }
  func.func @transform_1(%arg0: i32) -> (i32, i32) {
    %c0_i32 = arith.constant 0 : i32
    %c0_i32_0 = arith.constant 0 : i32
    %c0_i32_1 = arith.constant 0 : i32
    return %c0_i32, %c0_i32_0 : i32, i32
  }
  func.func @transform_2(%arg0: i32) -> (i32, i32) {
    %c0_i32 = arith.constant 0 : i32
    %c0_i32_0 = arith.constant 0 : i32
    %c0_i32_1 = arith.constant 0 : i32
    return %c0_i32, %c0_i32_0 : i32, i32
  }
  func.func @transform_3(%arg0: i32) -> (i32, i32) {
    %c0_i32 = arith.constant 0 : i32
    %c0_i32_0 = arith.constant 0 : i32
    %c0_i32_1 = arith.constant 0 : i32
    return %c0_i32, %c0_i32_0 : i32, i32
  }
  func.func @transform_4(%arg0: i32) -> (i32, i32) {
    %c0_i32 = arith.constant 0 : i32
    %c0_i32_0 = arith.constant 0 : i32
    %c0_i32_1 = arith.constant 0 : i32
    return %c0_i32, %c0_i32_0 : i32, i32
  }
  func.func @transform_5(%arg0: i32) -> (i32, i32) {
    %c0_i32 = arith.constant 0 : i32
    %c0_i32_0 = arith.constant 0 : i32
    %c0_i32_1 = arith.constant 0 : i32
    return %c0_i32, %c0_i32_0 : i32, i32
  }
  func.func @transform_6(%arg0: i32) -> (i32, i32) {
    %c0_i32 = arith.constant 0 : i32
    %c0_i32_0 = arith.constant 0 : i32
    %c0_i32_1 = arith.constant 0 : i32
    return %c0_i32, %c0_i32_0 : i32, i32
  }
  func.func @transform_7(%arg0: i32) -> (i32, i32) {
    %c0_i32 = arith.constant 0 : i32
    %c0_i32_0 = arith.constant 0 : i32
    %c0_i32_1 = arith.constant 0 : i32
    return %c0_i32, %c0_i32_0 : i32, i32
  }
  func.func @transform_8(%arg0: i32) -> (i32, i32) {
    %c0_i32 = arith.constant 0 : i32
    %c0_i32_0 = arith.constant 0 : i32
    %c0_i32_1 = arith.constant 0 : i32
    return %c0_i32, %c0_i32_0 : i32, i32
  }
  func.func @transform_9(%arg0: i32) -> (i32, i32) {
    %c0_i32 = arith.constant 0 : i32
    %c0_i32_0 = arith.constant 0 : i32
    %c0_i32_1 = arith.constant 0 : i32
    return %c0_i32, %c0_i32_0 : i32, i32
  }
  func.func @transform_10(%arg0: i32) -> (i32, i32) {
    %c0_i32 = arith.constant 0 : i32
    %c0_i32_0 = arith.constant 0 : i32
    %c0_i32_1 = arith.constant 0 : i32
    return %c0_i32, %c0_i32_0 : i32, i32
  }
}

</mosaic_0001>

<bundles_post_ra>
// kernel: tpu_custom_call.1
= control target key start
LH: loop header
LB: loop body
LE: loop exit
PB: predicated region body
PF: predicated region fallthrough
CT: control target
= control target key end

     0   :  { %vm172_vm0 = vcmask 1043456   ;;  %vm75_vm1 = vcmask 31744   ;;  %v3976_v42 = vmov 0.0   ;;  %s3977_s13 = smov 32   ;;  %s3978_s14 = smov 96   ;;  %vm652_vm2 = vcmask 261120   ;;  %s5018_s1 = inlined_call_operand.vmem [shape: f32[4,64], index: 1, kind: input, shape index: {}]   ;;  %s5019_s0 = inlined_call_operand.vmem [shape: f32[256,4], index: 0, kind: input, shape index: {}]   ;;  %s5020_s3 = inlined_call_operand.vmem [shape: f32[32,64], index: 3, kind: input, shape index: {}]   ;;  %s5021_s2 = inlined_call_operand.vmem [shape: f32[4,32], index: 2, kind: input, shape index: {}]   ;;  %s5022_s4 = inlined_call_operand.vmem [shape: f32[32,32], index: 4, kind: input, shape index: {}]   ;;  %s5023_s5 = inlined_call_operand.vmem [shape: f32[1,64], index: 5, kind: input, shape index: {}]   ;;  %s5024_s6 = inlined_call_operand.vmem [shape: f32[1,32], index: 6, kind: input, shape index: {}]   ;;  %s5025_s7 = inlined_call_operand.vmem [shape: f32[1,32], index: 7, kind: input, shape index: {}]   ;;  %s5026_s9 = inlined_call_operand.vmem [shape: f32[32,8], index: 9, kind: input, shape index: {}]   ;;  %s5027_s8 = inlined_call_operand.vmem [shape: f32[16,16], index: 8, kind: input, shape index: {}]   ;;  %s5028_s10 = inlined_call_operand.vmem [shape: f32[32,8], index: 10, kind: output, shape index: {}]  }
   0x1   :  { %v67_v0 = vld [vmem:[%s5018_s1] sm:$0xf]  ;;  %v36_v2 = vld [vmem:[%s5019_s0 + $0x8] sm:$0xff]  ;;  %v37_v3 = vld [vmem:[%s5019_s0 + $0x10] sm:$0xff]  ;;  %vm2875_vm3 = vcmask 130048   ;;  %vm2959_vm4 = vcmask 64512  }
   0x2   :  { %v35_v1 = vld [vmem:[%s5019_s0] sm:$0xff]  ;;  %3420 = vmatprep.subr.msk.mxu0 %vm172_vm0, %v67_v0  ;;  %v4051_v4 = vld [vmem:[%s5020_s3 + $0x18] sm:$0xff]  ;;  %v4065_v6 = vld [vmem:[%s5020_s3 + $0x10] sm:$0xff] }
   0x3   :  { %3422 = vmatprep.mubr.msk.f32.mxu0 %vm75_vm1, %v35_v1  ;;  %3421 = vmatpush3.msk.msra.mxu0 %vm172_vm0, %v67_v0  ;;  %v38_v5 = vld [vmem:[%s5019_s0 + $0x18] sm:$0xff]  ;;  %v39_v7 = vld [vmem:[%s5019_s0 + $0x20] sm:$0xff]  ;;  %v40_v9 = vld [vmem:[%s5019_s0 + $0x28] sm:$0xff] }
   0x4   :  { %3472 = vmatprep.mubr.msk.f32.mxu1 %vm75_vm1, %v35_v1  ;;  %3423 = vmatmul.mubr.msk.f32.vlgmr.msra.gmra.mxu0 %vm75_vm1, %v36_v2  ;;  %v401_v8 = vld [vmem:[%s5021_s2] sm:$0xf]  ;;  %v4085_v10 = vld [vmem:[%s5020_s3 + $0x8] sm:$0xff]  ;;  %v4090_v11 = vld [vmem:[%s5022_s4 + $0x18] sm:$0xff] }
   0x5   :  { %3520 = vmatprep.subr.mxu0 %v4051_v4  ;;  %3425 = vmatprep.mubr.msk.f32.mxu0 %vm75_vm1, %v37_v3  ;;  %v41_v12 = vld [vmem:[%s5019_s0 + $0x30] sm:$0xff]  ;;  %v4104_v13 = vld [vmem:[%s5020_s3] sm:$0xff]  ;;  %v42_v15 = vld [vmem:[%s5019_s0 + $0x38] sm:$0xff] }
   0x6   :  { %3521 = vmatpush3.msra.mxu0 %v4051_v4  ;;  %3470 = vmatprep.subr.msk.mxu1 %vm172_vm0, %v401_v8  ;;  %v4109_v14 = vld [vmem:[%s5022_s4 + $0x10] sm:$0xff]  ;;  %v43_v16 = vld [vmem:[%s5019_s0 + $0x40] sm:$0xff]  ;;  %v4126_v17 = vld [vmem:[%s5022_s4 + $0x8] sm:$0xff] }
   0x7   :  { %3522 = vmatprep.subr.mxu0 %v4065_v6  ;;  %3471 = vmatpush3.msk.msra.mxu1 %vm172_vm0, %v401_v8  ;;  %v44_v18 = vld [vmem:[%s5019_s0 + $0x48] sm:$0xff]  ;;  %v4138_v19 = vld [vmem:[%s5022_s4] sm:$0xff]  ;;  %v45_v20 = vld [vmem:[%s5019_s0 + $0x50] sm:$0xff] }
   0x8   :  { %3523 = vmatpush3.msra.mxu0 %v4065_v6  ;;  %3473 = vmatmul.mubr.msk.f32.vlgmr.msra.gmra.mxu1 %vm75_vm1, %v36_v2  ;;  %v46_v21 = vld [vmem:[%s5019_s0 + $0x58] sm:$0xff]  ;;  %v47_v22 = vld [vmem:[%s5019_s0 + $0x60] sm:$0xff]  ;;  %v48_v23 = vld [vmem:[%s5019_s0 + $0x68] sm:$0xff] }
   0x9   :  { %3426 = vmatmul.mubr.msk.f32.gmra.mxu0 %vm75_vm1, %v38_v5  ;;  %3524 = vmatprep.subr.mxu0 %v4085_v10  ;;  %v49_v24 = vld [vmem:[%s5019_s0 + $0x70] sm:$0xff]  ;;  %v50_v25 = vld [vmem:[%s5019_s0 + $0x78] sm:$0xff]  ;;  %v51_v26 = vld [vmem:[%s5019_s0 + $0x80] sm:$0xff] }
   0xa   :  { %3428 = vmatprep.mubr.msk.f32.mxu0 %vm75_vm1, %v39_v7  ;;  %3475 = vmatprep.mubr.msk.f32.mxu1 %vm75_vm1, %v37_v3  ;;  %v52_v27 = vld [vmem:[%s5019_s0 + $0x88] sm:$0xff]  ;;  %v53_v28 = vld [vmem:[%s5019_s0 + $0x90] sm:$0xff]  ;;  %v54_v29 = vld [vmem:[%s5019_s0 + $0x98] sm:$0xff] }
   0xb   :  { %3534 = vmatprep.subr.mxu1 %v4090_v11  ;;  %3525 = vmatpush3.msra.mxu0 %v4085_v10  ;;  %v55_v30 = vld [vmem:[%s5019_s0 + $0xa0] sm:$0xff]  ;;  %v56_v31 = vld [vmem:[%s5019_s0 + $0xa8] sm:$0xff]  ;;  %v57_v32 = vld [vmem:[%s5019_s0 + $0xb0] sm:$0xff] }
   0xc   :  { %3535 = vmatpush3.msra.mxu1 %v4090_v11  ;;  %3526 = vmatprep.subr.mxu0 %v4104_v13  ;;  %v58_v33 = vld [vmem:[%s5019_s0 + $0xb8] sm:$0xff]  ;;  %v59_v34 = vld [vmem:[%s5019_s0 + $0xc0] sm:$0xff]  ;;  %v60_v35 = vld [vmem:[%s5019_s0 + $0xc8] sm:$0xff] }
   0xd   :  { %3429 = vmatmul.mubr.msk.f32.gmra.mxu0 %vm75_vm1, %v40_v9  ;;  %3476 = vmatmul.mubr.msk.f32.gmra.mxu1 %vm75_vm1, %v38_v5  ;;  %v61_v36 = vld [vmem:[%s5019_s0 + $0xd0] sm:$0xff]  ;;  %v62_v37 = vld [vmem:[%s5019_s0 + $0xd8] sm:$0xff]  ;;  %v63_v38 = vld [vmem:[%s5019_s0 + $0xe0] sm:$0xff] }
   0xe   :  { %3431 = vmatprep.mubr.msk.f32.mxu0 %vm75_vm1, %v41_v12  ;;  %3478 = vmatprep.mubr.msk.f32.mxu1 %vm75_vm1, %v39_v7  ;;  %v64_v39 = vld [vmem:[%s5019_s0 + $0xe8] sm:$0xff]  ;;  %v65_v40 = vld [vmem:[%s5019_s0 + $0xf0] sm:$0xff]  ;;  %v66_v41 = vld [vmem:[%s5019_s0 + $0xf8] sm:$0xff] }
   0xf   :  { %3536 = vmatprep.subr.mxu1 %v4109_v14  ;;  %3527 = vmatpush3.msra.mxu0 %v4104_v13  ;;  %v4291_v48 = vld [vmem:[%s5023_s5] ss:$0 sm:$0xff] }
  0x10   :  { %3537 = vmatpush3.msra.mxu1 %v4109_v14  ;;  %3548 = vmatprep.subr.mxu0 %v4051_v4  ;;  %v4311_v59 = vld [vmem:[%s5024_s6] ss:$0 sm:$0xff] }
  0x11   :  { %3432 = vmatmul.mubr.msk.f32.gmra.mxu0 %vm75_vm1, %v42_v15  ;;  %3479 = vmatmul.mubr.msk.f32.gmra.mxu1 %vm75_vm1, %v40_v9 }
  0x12   :  { %3434 = vmatprep.mubr.msk.f32.mxu0 %vm75_vm1, %v43_v16  ;;  %3538 = vmatprep.subr.mxu1 %v4126_v17 }
  0x13   :  { %3481 = vmatprep.mubr.msk.f32.mxu1 %vm75_vm1, %v41_v12  ;;  %3539 = vmatpush3.msra.mxu1 %v4126_v17 }
  0x14   :  { %3540 = vmatprep.subr.mxu1 %v4138_v19 }
  0x15   :  { %3435 = vmatmul.mubr.msk.f32.gmra.mxu0 %vm75_vm1, %v44_v18  ;;  %3541 = vmatpush3.msra.mxu1 %v4138_v19 }
  0x16   :  { %3437 = vmatprep.mubr.msk.f32.mxu0 %vm75_vm1, %v45_v20  ;;  %3482 = vmatmul.mubr.msk.f32.gmra.mxu1 %vm75_vm1, %v42_v15 }
  0x17   :  { %3484 = vmatprep.mubr.msk.f32.mxu1 %vm75_vm1, %v43_v16  ;;  %3562 = vmatprep.subr.mxu1 %v4090_v11 }
  0x19   :  { %3438 = vmatmul.mubr.msk.f32.gmra.mxu0 %vm75_vm1, %v46_v21 }
  0x1a   :  { %3440 = vmatprep.mubr.msk.f32.mxu0 %vm75_vm1, %v47_v22  ;;  %3485 = vmatmul.mubr.msk.f32.gmra.mxu1 %vm75_vm1, %v44_v18 }
  0x1b   :  { %3487 = vmatprep.mubr.msk.f32.mxu1 %vm75_vm1, %v45_v20 }
  0x1d   :  { %3441 = vmatmul.mubr.msk.f32.gmra.mxu0 %vm75_vm1, %v48_v23 }
  0x1e   :  { %3443 = vmatprep.mubr.msk.f32.mxu0 %vm75_vm1, %v49_v24  ;;  %3488 = vmatmul.mubr.msk.f32.gmra.mxu1 %vm75_vm1, %v46_v21 }
  0x1f   :  { %3490 = vmatprep.mubr.msk.f32.mxu1 %vm75_vm1, %v47_v22 }
  0x21   :  { %3444 = vmatmul.mubr.msk.f32.gmra.mxu0 %vm75_vm1, %v50_v25 }
  0x22   :  { %3446 = vmatprep.mubr.msk.f32.mxu0 %vm75_vm1, %v51_v26  ;;  %3491 = vmatmul.mubr.msk.f32.gmra.mxu1 %vm75_vm1, %v48_v23 }
  0x23   :  { %3493 = vmatprep.mubr.msk.f32.mxu1 %vm75_vm1, %v49_v24 }
  0x25   :  { %3447 = vmatmul.mubr.msk.f32.gmra.mxu0 %vm75_vm1, %v52_v27 }
  0x26   :  { %3449 = vmatprep.mubr.msk.f32.mxu0 %vm75_vm1, %v53_v28  ;;  %3494 = vmatmul.mubr.msk.f32.gmra.mxu1 %vm75_vm1, %v50_v25 }
  0x27   :  { %3496 = vmatprep.mubr.msk.f32.mxu1 %vm75_vm1, %v51_v26 }
  0x29   :  { %3450 = vmatmul.mubr.msk.f32.gmra.mxu0 %vm75_vm1, %v54_v29 }
  0x2a   :  { %3452 = vmatprep.mubr.msk.f32.mxu0 %vm75_vm1, %v55_v30  ;;  %3497 = vmatmul.mubr.msk.f32.gmra.mxu1 %vm75_vm1, %v52_v27 }
  0x2b   :  { %3499 = vmatprep.mubr.msk.f32.mxu1 %vm75_vm1, %v53_v28 }
  0x2d   :  { %3453 = vmatmul.mubr.msk.f32.gmra.mxu0 %vm75_vm1, %v56_v31 }
  0x2e   :  { %3455 = vmatprep.mubr.msk.f32.mxu0 %vm75_vm1, %v57_v32  ;;  %3500 = vmatmul.mubr.msk.f32.gmra.mxu1 %vm75_vm1, %v54_v29 }
  0x2f   :  { %3502 = vmatprep.mubr.msk.f32.mxu1 %vm75_vm1, %v55_v30 }
  0x31   :  { %3456 = vmatmul.mubr.msk.f32.gmra.mxu0 %vm75_vm1, %v58_v33 }
  0x32   :  { %3458 = vmatprep.mubr.msk.f32.mxu0 %vm75_vm1, %v59_v34  ;;  %3503 = vmatmul.mubr.msk.f32.gmra.mxu1 %vm75_vm1, %v56_v31 }
  0x33   :  { %3505 = vmatprep.mubr.msk.f32.mxu1 %vm75_vm1, %v57_v32 }
  0x35   :  { %3459 = vmatmul.mubr.msk.f32.gmra.mxu0 %vm75_vm1, %v60_v35 }
  0x36   :  { %3461 = vmatprep.mubr.msk.f32.mxu0 %vm75_vm1, %v61_v36  ;;  %3506 = vmatmul.mubr.msk.f32.gmra.mxu1 %vm75_vm1, %v58_v33 }
  0x37   :  { %3508 = vmatprep.mubr.msk.f32.mxu1 %vm75_vm1, %v59_v34 }
  0x39   :  { %3462 = vmatmul.mubr.msk.f32.gmra.mxu0 %vm75_vm1, %v62_v37 }
  0x3a   :  { %3464 = vmatprep.mubr.msk.f32.mxu0 %vm75_vm1, %v63_v38  ;;  %3509 = vmatmul.mubr.msk.f32.gmra.mxu1 %vm75_vm1, %v60_v35 }
  0x3b   :  { %3511 = vmatprep.mubr.msk.f32.mxu1 %vm75_vm1, %v61_v36 }
  0x3d   :  { %3465 = vmatmul.mubr.msk.f32.gmra.mxu0 %vm75_vm1, %v64_v39 }
  0x3e   :  { %3467 = vmatprep.mubr.msk.f32.mxu0 %vm75_vm1, %v65_v40  ;;  %3512 = vmatmul.mubr.msk.f32.gmra.mxu1 %vm75_vm1, %v62_v37 }
  0x3f   :  { %3514 = vmatprep.mubr.msk.f32.mxu1 %vm75_vm1, %v63_v38 }
  0x41   :  { %3468 = vmatmul.mubr.msk.f32.gmra.mxu0 %vm75_vm1, %v66_v41 }
  0x42   :  { %3528 = vmatprep.mubr.f32.mxu0 %v3976_v42  ;;  %3515 = vmatmul.mubr.msk.f32.gmra.mxu1 %vm75_vm1, %v64_v39 }
  0x43   :  { %3517 = vmatprep.mubr.msk.f32.mxu1 %vm75_vm1, %v65_v40 }
  0x45   :  { %3529 = vmatmul.mubr.f32.vlgmr.msra.gmra.mxu0 %v3976_v42 }
  0x46   :  { %3531 = vmatprep.mubr.f32.mxu0 %v3976_v42  ;;  %3549 = vmatpush3.msra.mxu0 %v4051_v4 }
  0x47   :  { %3518 = vmatmul.mubr.msk.f32.gmra.mxu1 %vm75_vm1, %v66_v41  ;;  %3550 = vmatprep.subr.mxu0 %v4065_v6 }
  0x48   :  { %3542 = vmatprep.mubr.f32.mxu1 %v3976_v42  ;;  %3551 = vmatpush3.msra.mxu0 %v4065_v6 }
  0x49   :  { %3532 = vmatmul.mubr.f32.gmra.mxu0 %v3976_v42  ;;  %3552 = vmatprep.subr.mxu0 %v4085_v10 }
  0x4a   :  { %3553 = vmatpush3.msra.mxu0 %v4085_v10 }
  0x4b   :  { %3543 = vmatmul.mubr.f32.vlgmr.msra.gmra.mxu1 %v3976_v42  ;;  %3554 = vmatprep.subr.mxu0 %v4104_v13 }
  0x4c   :  { %3545 = vmatprep.mubr.f32.mxu1 %v3976_v42  ;;  %3563 = vmatpush3.msra.mxu1 %v4090_v11 }
  0x4d   :  { %3564 = vmatprep.subr.mxu1 %v4109_v14  ;;  %3555 = vmatpush3.msra.mxu0 %v4104_v13 }
  0x4e   :  { %3565 = vmatpush3.msra.mxu1 %v4109_v14  ;;  %3576 = vmatprep.subr.mxu0 %v4051_v4 }
  0x4f   :  { %3546 = vmatmul.mubr.f32.gmra.mxu1 %v3976_v42  ;;  %3566 = vmatprep.subr.mxu1 %v4126_v17 }
  0x50   :  { %3567 = vmatpush3.msra.mxu1 %v4126_v17 }
  0x51   :  { %3568 = vmatprep.subr.mxu1 %v4138_v19 }
  0x52   :  { %3569 = vmatpush3.msra.mxu1 %v4138_v19 }
  0x53   :  { %3590 = vmatprep.subr.mxu1 %v4090_v11 }
  0xc4   :  { %v4278_v43 = vpop.f32.mrf.mxu0 }
  0xc6   :  { %v4280_v44 = vpop.f32.mrf.mxu0 }
  0xc8   :  { %v4286_v47 = vpop.f32.mrf.mxu1 }
  0xc9   :  { %v4282_v45 = vpop.f32.mrf.mxu0 }
  0xca   :  { %v4293_v50 = vpop.f32.mrf.mxu1 }
  0xcb   :  { %v4284_v46 = vpop.f32.mrf.mxu0 }
  0xcd   :  { %v3430_v49 = vpop.f32.mrf.mxu0  ;;  %v4298_v53 = vpop.f32.mrf.mxu1 }
  0xce   :  { %v4296_v51 = vadd.f32 %v3430_v49, %v4291_v48 }
  0xcf   :  { %v262_v52 = vpop.f32.mrf.mxu0  ;;  %v4303_v56 = vpop.f32.mrf.mxu1 }
  0xd0   :  { %v4301_v54 = vadd.f32 %v4291_v48, %v262_v52 }
  0xd1   :  { %v3433_v55 = vpop.f32.mrf.mxu0  ;;  %v3480_v60 = vpop.f32.mrf.mxu1 }
  0xd2   :  { %v4306_v57 = vadd.f32 %v3433_v55, %v4291_v48  ;;  %v4317_v62 = vadd.f32 %v3480_v60, %v4311_v59 }
  0xd3   :  { %v272_v58 = vpop.f32.mrf.mxu0  ;;  %v498_v0 = vpop.f32.mrf.mxu1 }
  0xd4   :  { %v4314_v61 = vadd.f32 %v4291_v48, %v272_v58  ;;  %v4323_v2 = vadd.f32 %v4311_v59, %v498_v0 }
  0xd5   :  { %v3436_v63 = vpop.f32.mrf.mxu0 }
  0xd6   :  { %v4320_v1 = vadd.f32 %v3436_v63, %v4291_v48  ;;  %v3483_v5 = vpop.f32.mrf.mxu1 }
  0xd7   :  { %v282_v3 = vpop.f32.mrf.mxu0  ;;  %v4329_v8 = vadd.f32 %v3483_v5, %v4311_v59 }
  0xd8   :  { %v4326_v7 = vadd.f32 %v4291_v48, %v282_v3  ;;  %v508_v12 = vpop.f32.mrf.mxu1 }
  0xd9   :  { %v3439_v9 = vpop.f32.mrf.mxu0  ;;  %v4335_v16 = vadd.f32 %v4311_v59, %v508_v12 }
  0xda   :  { %v4332_v15 = vadd.f32 %v3439_v9, %v4291_v48  ;;  %v3486_v20 = vpop.f32.mrf.mxu1 }
  0xdb   :  { %v292_v18 = vpop.f32.mrf.mxu0  ;;  %v4341_v22 = vadd.f32 %v3486_v20, %v4311_v59 }
  0xdc   :  { %v4338_v21 = vadd.f32 %v4291_v48, %v292_v18  ;;  %v518_v24 = vpop.f32.mrf.mxu1 }
  0xdd   :  { %v3442_v23 = vpop.f32.mrf.mxu0  ;;  %v4347_v26 = vadd.f32 %v4311_v59, %v518_v24 }
  0xde   :  { %v4344_v25 = vadd.f32 %v3442_v23, %v4291_v48  ;;  %v3489_v28 = vpop.f32.mrf.mxu1 }
  0xdf   :  { %v302_v27 = vpop.f32.mrf.mxu0  ;;  %v4353_v30 = vadd.f32 %v3489_v28, %v4311_v59 }
  0xe0   :  { %v4350_v29 = vadd.f32 %v4291_v48, %v302_v27  ;;  %v528_v32 = vpop.f32.mrf.mxu1 }
  0xe1   :  { %v3445_v31 = vpop.f32.mrf.mxu0  ;;  %v4359_v34 = vadd.f32 %v4311_v59, %v528_v32 }
  0xe2   :  { %v4356_v33 = vadd.f32 %v3445_v31, %v4291_v48  ;;  %v3492_v36 = vpop.f32.mrf.mxu1 }
  0xe3   :  { %v312_v35 = vpop.f32.mrf.mxu0  ;;  %v4365_v38 = vadd.f32 %v3492_v36, %v4311_v59 }
  0xe4   :  { %v4362_v37 = vadd.f32 %v4291_v48, %v312_v35  ;;  %v538_v40 = vpop.f32.mrf.mxu1 }
  0xe5   :  { %v3448_v39 = vpop.f32.mrf.mxu0  ;;  %v4371_v42 = vadd.f32 %v4311_v59, %v538_v40 }
  0xe6   :  { %v4368_v41 = vadd.f32 %v3448_v39, %v4291_v48  ;;  %v3495_v52 = vpop.f32.mrf.mxu1 }
  0xe7   :  { %v322_v49 = vpop.f32.mrf.mxu0  ;;  %v4377_v58 = vadd.f32 %v3495_v52, %v4311_v59 }
  0xe8   :  { %v4374_v55 = vadd.f32 %v4291_v48, %v322_v49  ;;  %v548_v63 = vpop.f32.mrf.mxu1 }
  0xe9   :  { %v3451_v60 = vpop.f32.mrf.mxu0  ;;  %v4383_v3 = vadd.f32 %v4311_v59, %v548_v63 }
  0xea   :  { %v4380_v0 = vadd.f32 %v3451_v60, %v4291_v48  ;;  %v3498_v9 = vpop.f32.mrf.mxu1 }
  0xeb   :  { %v332_v5 = vpop.f32.mrf.mxu0  ;;  %v4389_v18 = vadd.f32 %v3498_v9, %v4311_v59 }
  0xec   :  { %v4386_v12 = vadd.f32 %v4291_v48, %v332_v5  ;;  %v558_v23 = vpop.f32.mrf.mxu1 }
  0xed   :  { %v3454_v20 = vpop.f32.mrf.mxu0  ;;  %v4395_v27 = vadd.f32 %v4311_v59, %v558_v23 }
  0xee   :  { %v4392_v24 = vadd.f32 %v3454_v20, %v4291_v48  ;;  %v3501_v31 = vpop.f32.mrf.mxu1 }
  0xef   :  { %v342_v28 = vpop.f32.mrf.mxu0  ;;  %v4401_v35 = vadd.f32 %v3501_v31, %v4311_v59 }
  0xf0   :  { %5029 = vst [vmem:[#allocation2_spill] sm:$0xff] %v4392_v24  ;;  %v4398_v32 = vadd.f32 %v4291_v48, %v342_v28  ;;  %v568_v39 = vpop.f32.mrf.mxu1 }
  0xf1   :  { %v3457_v36 = vpop.f32.mrf.mxu0  ;;  %v4407_v49 = vadd.f32 %v4311_v59, %v568_v39 }
  0xf2   :  { %5030 = vst [vmem:[#allocation3_spill] sm:$0xff] %v4398_v32  ;;  %v4404_v40 = vadd.f32 %v3457_v36, %v4291_v48  ;;  %v3504_v60 = vpop.f32.mrf.mxu1 }
  0xf3   :  { %5032 = vst [vmem:[#allocation5_spill] sm:$0xff] %v4407_v49  ;;  %v352_v52 = vpop.f32.mrf.mxu0  ;;  %v4413_v5 = vadd.f32 %v3504_v60, %v4311_v59 }
  0xf4   :  { %5031 = vst [vmem:[#allocation4_spill] sm:$0xff] %v4404_v40  ;;  %v4410_v63 = vadd.f32 %v4291_v48, %v352_v52  ;;  %v578_v20 = vpop.f32.mrf.mxu1 }
  0xf5   :  { %5034 = vst [vmem:[#allocation7_spill] sm:$0xff] %v4413_v5  ;;  %v3460_v9 = vpop.f32.mrf.mxu0  ;;  %v4419_v28 = vadd.f32 %v4311_v59, %v578_v20 }
  0xf6   :  { %5033 = vst [vmem:[#allocation6_spill] sm:$0xff] %v4410_v63  ;;  %v4416_v23 = vadd.f32 %v3460_v9, %v4291_v48  ;;  %v3507_v36 = vpop.f32.mrf.mxu1 }
  0xf7   :  { %5036 = vst [vmem:[#allocation9_spill] sm:$0xff] %v4419_v28  ;;  %v362_v31 = vpop.f32.mrf.mxu0  ;;  %v4425_v40 = vadd.f32 %v3507_v36, %v4311_v59 }
  0xf8   :  { %5035 = vst [vmem:[#allocation8_spill] sm:$0xff] %v4416_v23  ;;  %v4422_v39 = vadd.f32 %v4291_v48, %v362_v31  ;;  %v588_v63 = vpop.f32.mrf.mxu1 }
  0xf9   :  { %5038 = vst [vmem:[#allocation11_spill] sm:$0xff] %v4425_v40  ;;  %v3463_v52 = vpop.f32.mrf.mxu0  ;;  %v4431_v5 = vadd.f32 %v4311_v59, %v588_v63 }
  0xfa   :  { %5037 = vst [vmem:[#allocation10_spill] sm:$0xff] %v4422_v39  ;;  %v4428_v60 = vadd.f32 %v3463_v52, %v4291_v48  ;;  %v3510_v23 = vpop.f32.mrf.mxu1 }
  0xfb   :  { %5040 = vst [vmem:[#allocation13_spill] sm:$0xff] %v4431_v5  ;;  %v372_v9 = vpop.f32.mrf.mxu0  ;;  %v4437_v28 = vadd.f32 %v3510_v23, %v4311_v59 }
  0xfc   :  { %5039 = vst [vmem:[#allocation12_spill] sm:$0xff] %v4428_v60  ;;  %v4434_v20 = vadd.f32 %v4291_v48, %v372_v9  ;;  %v598_v39 = vpop.f32.mrf.mxu1 }
  0xfd   :  { %5042 = vst [vmem:[#allocation15_spill] sm:$0xff] %v4437_v28  ;;  %v3466_v31 = vpop.f32.mrf.mxu0  ;;  %v4443_v40 = vadd.f32 %v4311_v59, %v598_v39  ;;  %v248_v39 = vadd.f32 %v4278_v43, %v4291_v48  ;;  %v258_v43 = vadd.f32 %v4282_v45, %v4291_v48 }
  0xfe   :  { %5041 = vst [vmem:[#allocation14_spill] sm:$0xff] %v4434_v20  ;;  %v4440_v36 = vadd.f32 %v3466_v31, %v4291_v48  ;;  %v3513_v60 = vpop.f32.mrf.mxu1 }
  0xff   :  { %5044 = vst [vmem:[#allocation17_spill] sm:$0xff] %v4443_v40  ;;  %v382_v52 = vpop.f32.mrf.mxu0  ;;  %v4449_v5 = vadd.f32 %v3513_v60, %v4311_v59 }
 0x100   :  { %5043 = vst [vmem:[#allocation16_spill] sm:$0xff] %v4440_v36  ;;  %v4446_v63 = vadd.f32 %v4291_v48, %v382_v52  ;;  %v608_v20 = vpop.f32.mrf.mxu1 }
 0x101   :  { %5046 = vst [vmem:[#allocation19_spill] sm:$0xff] %v4449_v5  ;;  %v3469_v9 = vpop.f32.mrf.mxu0  ;;  %v4455_v28 = vadd.f32 %v4311_v59, %v608_v20 }
 0x102   :  { %5045 = vst [vmem:[#allocation18_spill] sm:$0xff] %v4446_v63  ;;  %v4452_v23 = vadd.f32 %v3469_v9, %v4291_v48  ;;  %v3516_v36 = vpop.f32.mrf.mxu1  ;;  %v243_v9 = vadd.f32 %v4291_v48, %v4280_v44 }
 0x103   :  { %5048 = vst [vmem:[#allocation21_spill] sm:$0xff] %v4455_v28  ;;  %v392_v31 = vpop.f32.mrf.mxu0  ;;  %v4463_v52 = vadd.f32 %v3516_v36, %v4311_v59  ;;  %v253_v36 = vadd.f32 %v4291_v48, %v4284_v46 }
 0x104   :  { %5047 = vst [vmem:[#allocation20_spill] sm:$0xff] %v4452_v23  ;;  %v4460_v40 = vadd.f32 %v4291_v48, %v392_v31  ;;  %v618_v63 = vpop.f32.mrf.mxu1 }
 0x105   :  { %5050 = vst [vmem:[#allocation23_spill] sm:$0xff] %v4463_v52  ;;  %v3530_v60 = vpop.f32.mrf.mxu0  ;;  %v4468_v20 = vadd.f32 %v4311_v59, %v618_v63 }
 0x106   :  { %5049 = vst [vmem:[#allocation22_spill] sm:$0xff] %v4460_v40  ;;  %v827_v23 = vadd.f32 %v3530_v60, %v248_v39 }
 0x107   :  { %5051 = vst [vmem:[#allocation24_spill] sm:$0xff] %v4468_v20  ;;  %v722_v28 = vpop.f32.mrf.mxu0  ;;  %v3519_v5 = vpop.f32.mrf.mxu1 }
 0x108   :  { %v3115_v32 = vmul.f32 -1.442695, %v827_v23  ;;  %v826_v31 = vadd.f32 %v722_v28, %v243_v9  ;;  %v4473_v40 = vadd.f32 %v3519_v5, %v4311_v59 }
 0x109   :  { %v3533_v52 = vpop.f32.mrf.mxu0  ;;  %v628_v24 = vpop.f32.mrf.mxu1 }
 0x10a   :  { %5052 = vst [vmem:[#allocation25_spill] sm:$0xff] %v4473_v40  ;;  %3775 = vpow2.f32 %v3115_v32  ;;  %v3114_v44 = vmul.f32 -1.442695, %v826_v31  ;;  %v829_v39 = vadd.f32 %v3533_v52, %v258_v43  ;;  %v4478_v63 = vadd.f32 %v4311_v59, %v628_v24  ;;  %v4483_v43 = vld [vmem:[%s5025_s7] ss:$0 sm:$0xff] }
 0x10b   :  { %v732_v60 = vpop.f32.mrf.mxu0  ;;  %v3544_v52 = vpop.f32.mrf.mxu1 }
 0x10c   :  { %5053 = vst [vmem:[#allocation26_spill] sm:$0xff] %v4478_v63  ;;  %3777 = vpow2.f32 %v3114_v44  ;;  %v3117_v20 = vmul.f32 -1.442695, %v829_v39  ;;  %v828_v45 = vadd.f32 %v732_v60, %v253_v36  ;;  %v813_v36 = vadd.f32 %v3544_v52, %v4483_v43 }
 0x10e   :  { %3779 = vpow2.f32 %v3117_v20  ;;  %v3116_v28 = vmul.f32 -1.442695, %v828_v45  ;;  %v807_v20 = vpop.f32.mrf.mxu1 }
 0x10f   :  { %v808_v45 = vadd.f32 %v4483_v43, %v807_v20  ;;  %v494_v20 = vadd.f32 %v4298_v53, %v4311_v59 }
 0x110   :  { %3781 = vpow2.f32 %v3116_v28  ;;  %v3547_v44 = vpop.f32.mrf.mxu1 }
 0x111   :  { %v823_v28 = vadd.f32 %v3547_v44, %v4483_v43  ;;  %v489_v44 = vadd.f32 %v4311_v59, %v4303_v56 }
 0x117   :  { %v3776_v5 = vpop.eup %3775 }
 0x118   :  { %v843_v23 = vadd.f32 1.0, %v3776_v5 }
 0x119   :  { %v3778_v9 = vpop.eup %3777 }
 0x11a   :  { %3783 = vrcp.f32 %v843_v23  ;;  %v842_v46 = vadd.f32 1.0, %v3778_v9  ;;  %v817_v23 = vpop.f32.mrf.mxu1  ;;  %v484_v9 = vadd.f32 %v4286_v47, %v4311_v59 }
 0x11b   :  { %v3780_v48 = vpop.eup %3779  ;;  %v818_v63 = vadd.f32 %v4483_v43, %v817_v23 }
 0x11c   :  { %3785 = vrcp.f32 %v842_v46  ;;  %v845_v32 = vadd.f32 1.0, %v3780_v48  ;;  %v479_v46 = vadd.f32 %v4311_v59, %v4293_v50 }
 0x11d   :  { %v3782_v31 = vpop.eup %3781 }
 0x11e   :  { %3787 = vrcp.f32 %v845_v32  ;;  %v844_v24 = vadd.f32 1.0, %v3782_v31 }
 0x120   :  { %3789 = vrcp.f32 %v844_v24 }
 0x127   :  { %v3784_v39 = vpop.eup %3783 }
 0x128   :  { %v855_v60 = vmul.f32 %v3784_v39, %v813_v36 }
 0x129   :  { %v3786_v5 = vpop.eup %3785 }
 0x12a   :  { %v854_v48 = vmul.f32 %v3786_v5, %v808_v45  ;;  %v859_v31 = vadd.f32 %v855_v60, %v484_v9 }
 0x12b   :  { %v3788_v32 = vpop.eup %3787 }
 0x12c   :  { %v858_v24 = vadd.f32 %v854_v48, %v479_v46  ;;  %v857_v52 = vmul.f32 %v3788_v32, %v823_v28 }
 0x12d   :  { %v3790_v36 = vpop.eup %3789 }
 0x12e   :  { %3791 = vtanh.f32 %v858_v24  ;;  %v856_v40 = vmul.f32 %v3790_v36, %v818_v63  ;;  %v861_v47 = vadd.f32 %v857_v52, %v494_v20 }
 0x12f   :  { %3793 = vtanh.f32 %v859_v31 }
 0x130   :  { %v860_v49 = vadd.f32 %v856_v40, %v489_v44 }
 0x132   :  { %3795 = vtanh.f32 %v860_v49 }
 0x133   :  { %3797 = vtanh.f32 %v861_v47 }
 0x13b   :  { %v3792_v50 = vpop.eup %3791 }
 0x13c   :  { %v866_v60 = vsub.f32 0.0, %v3792_v50  ;;  %v3794_v45 = vpop.eup %3793 }
 0x13d   :  { %v867_v9 = vsub.f32 0.0, %v3794_v45 }
 0x13e   :  { %874 = vrot.lane.b32.xlu0 %v866_v60, %s3977_s13 }
 0x13f   :  { %v3796_v28 = vpop.eup %3795 }
 0x140   :  { %v868_v23 = vsub.f32 0.0, %v3796_v28  ;;  %v3798_v53 = vpop.eup %3797 }
 0x141   :  { %v869_v56 = vsub.f32 0.0, %v3798_v53 }
 0x142   :  { %878 = vrot.lane.b32.xlu1 %v868_v23, %s3977_s13  ;;  %876 = vrot.lane.b32.xlu0 %v867_v9, %s3977_s13 }
 0x146   :  { %880 = vrot.lane.b32.xlu1 %v869_v56, %s3977_s13 }
 0x1b0   :  { %v875_v59 = vpop.permute.xlu0 %874 }
 0x1b1   :  { %v886_v40 = vmul.f32 %v3786_v5, %v875_v59 }
 0x1b3   :  { %894 = vrot.lane.b32.xlu0 %v886_v40, %s3978_s14 }
 0x1b4   :  { %v879_v49 = vpop.permute.xlu1 %878  ;;  %v877_v63 = vpop.permute.xlu0 %876 }
 0x1b5   :  { %v888_v46 = vmul.f32 %v3790_v36, %v879_v49  ;;  %v887_v48 = vmul.f32 %v3784_v39, %v877_v63 }
 0x1b7   :  { %898 = vrot.lane.b32.xlu0 %v888_v46, %s3978_s14  ;;  %896 = vrot.lane.b32.xlu1 %v887_v48, %s3978_s14 }
 0x1b8   :  { %v881_v31 = vpop.permute.xlu1 %880 }
 0x1b9   :  { %v889_v24 = vmul.f32 %v3788_v32, %v881_v31 }
 0x1bb   :  { %900 = vrot.lane.b32.xlu1 %v889_v24, %s3978_s14 }
 0x225   :  { %v895_v52 = vpop.permute.xlu0 %894 }
 0x226   :  { %v4505_v20 = vadd.f32 %v3792_v50, %v895_v52 }
 0x228   :  { %3556 = vmatprep.mubr.msk.f32.mxu0 %vm652_vm2, %v4505_v20  ;;  %3570 = vmatprep.mubr.msk.f32.mxu1 %vm652_vm2, %v4505_v20 }
 0x229   :  { %v897_v5 = vpop.permute.xlu1 %896  ;;  %v899_v39 = vpop.permute.xlu0 %898 }
 0x22a   :  { %v4511_v36 = vadd.f32 %v3794_v45, %v897_v5  ;;  %v4513_v44 = vadd.f32 %v3796_v28, %v899_v39 }
 0x22c   :  { %3557 = vmatmul.mubr.msk.f32.vlgmr.msra.gmra.mxu0 %vm652_vm2, %v4511_v36  ;;  %3571 = vmatmul.mubr.msk.f32.vlgmr.msra.gmra.mxu1 %vm652_vm2, %v4511_v36 }
 0x22d   :  { %v901_v32 = vpop.permute.xlu1 %900  ;;  %3559 = vmatprep.mubr.msk.f32.mxu0 %vm652_vm2, %v4513_v44  ;;  %3573 = vmatprep.mubr.msk.f32.mxu1 %vm652_vm2, %v4513_v44 }
 0x22e   :  { %v4523_v47 = vadd.f32 %v3798_v53, %v901_v32  ;;  %3577 = vmatpush3.msra.mxu0 %v4051_v4  ;;  %3591 = vmatpush3.msra.mxu1 %v4090_v11 }
 0x22f   :  { %3578 = vmatprep.subr.mxu0 %v4065_v6  ;;  %3592 = vmatprep.subr.mxu1 %v4109_v14 }
 0x230   :  { %3560 = vmatmul.mubr.msk.f32.gmra.mxu0 %vm652_vm2, %v4523_v47  ;;  %3574 = vmatmul.mubr.msk.f32.gmra.mxu1 %vm652_vm2, %v4523_v47 }
 0x231   :  { %3579 = vmatpush3.msra.mxu0 %v4065_v6  ;;  %3593 = vmatpush3.msra.mxu1 %v4109_v14 }
 0x232   :  { %3580 = vmatprep.subr.mxu0 %v4085_v10  ;;  %3594 = vmatprep.subr.mxu1 %v4126_v17 }
 0x233   :  { %3581 = vmatpush3.msra.mxu0 %v4085_v10  ;;  %3595 = vmatpush3.msra.mxu1 %v4126_v17 }
 0x234   :  { %3582 = vmatprep.subr.mxu0 %v4104_v13  ;;  %3596 = vmatprep.subr.mxu1 %v4138_v19 }
 0x235   :  { %3583 = vmatpush3.msra.mxu0 %v4104_v13  ;;  %3597 = vmatpush3.msra.mxu1 %v4138_v19 }
 0x236   :  { %3604 = vmatprep.subr.mxu0 %v4051_v4  ;;  %3618 = vmatprep.subr.mxu1 %v4090_v11 }
 0x2ec   :  { %v3558_v50 = vpop.f32.mrf.mxu0  ;;  %v3572_v5 = vpop.f32.mrf.mxu1 }
 0x2ed   :  { %v1093_v60 = vadd.f32 %v3558_v50, %v4296_v51 }
 0x2ee   :  { %v988_v45 = vpop.f32.mrf.mxu0  ;;  %v1073_v39 = vpop.f32.mrf.mxu1 }
 0x2ef   :  { %v3127_v28 = vmul.f32 -1.442695, %v1093_v60  ;;  %v1092_v23 = vadd.f32 %v988_v45, %v4301_v54  ;;  %v1074_v45 = vadd.f32 %v4483_v43, %v1073_v39 }
 0x2f0   :  { %v3561_v9 = vpop.f32.mrf.mxu0  ;;  %v3575_v32 = vpop.f32.mrf.mxu1 }
 0x2f1   :  { %3799 = vpow2.f32 %v3127_v28  ;;  %v3126_v53 = vmul.f32 -1.442695, %v1092_v23  ;;  %v1095_v56 = vadd.f32 %v3561_v9, %v4306_v57 }
 0x2f2   :  { %v998_v59 = vpop.f32.mrf.mxu0  ;;  %v1083_v23 = vpop.f32.mrf.mxu1 }
 0x2f3   :  { %3801 = vpow2.f32 %v3126_v53  ;;  %v3129_v40 = vmul.f32 -1.442695, %v1095_v56  ;;  %v1094_v49 = vadd.f32 %v998_v59, %v4314_v61  ;;  %v1079_v61 = vadd.f32 %v3572_v5, %v4483_v43 }
 0x2f4   :  { %v1089_v56 = vadd.f32 %v3575_v32, %v4483_v43 }
 0x2f5   :  { %3803 = vpow2.f32 %v3129_v40  ;;  %v3128_v63 = vmul.f32 -1.442695, %v1094_v49 }
 0x2f7   :  { %3805 = vpow2.f32 %v3128_v63  ;;  %v1084_v63 = vadd.f32 %v4483_v43, %v1083_v23 }
 0x2fe   :  { %v3800_v46 = vpop.eup %3799 }
 0x2ff   :  { %v1109_v48 = vadd.f32 1.0, %v3800_v46 }
 0x300   :  { %v3802_v51 = vpop.eup %3801 }
 0x301   :  { %3807 = vrcp.f32 %v1109_v48  ;;  %v1108_v31 = vadd.f32 1.0, %v3802_v51 }
 0x302   :  { %v3804_v24 = vpop.eup %3803 }
 0x303   :  { %3809 = vrcp.f32 %v1108_v31  ;;  %v1111_v54 = vadd.f32 1.0, %v3804_v24 }
 0x304   :  { %v3806_v52 = vpop.eup %3805 }
 0x305   :  { %3811 = vrcp.f32 %v1111_v54  ;;  %v1110_v57 = vadd.f32 1.0, %v3806_v52 }
 0x307   :  { %3813 = vrcp.f32 %v1110_v57 }
 0x30e   :  { %v3808_v50 = vpop.eup %3807 }
 0x30f   :  { %v1121_v60 = vmul.f32 %v3808_v50, %v1079_v61 }
 0x310   :  { %v3810_v28 = vpop.eup %3809 }
 0x311   :  { %v1125_v9 = vadd.f32 %v1121_v60, %v4317_v62  ;;  %v1120_v53 = vmul.f32 %v3810_v28, %v1074_v45 }
 0x312   :  { %v3812_v59 = vpop.eup %3811 }
 0x313   :  { %3815 = vtanh.f32 %v1125_v9  ;;  %v1124_v40 = vadd.f32 %v1120_v53, %v4323_v2  ;;  %v1123_v49 = vmul.f32 %v3812_v59, %v1089_v56 }
 0x314   :  { %v3814_v46 = vpop.eup %3813 }
 0x315   :  { %3817 = vtanh.f32 %v1124_v40  ;;  %v1127_v48 = vadd.f32 %v1123_v49, %v4329_v8  ;;  %v1122_v51 = vmul.f32 %v3814_v46, %v1084_v63 }
 0x317   :  { %3819 = vtanh.f32 %v1127_v48  ;;  %v1126_v31 = vadd.f32 %v1122_v51, %v4335_v16 }
 0x319   :  { %3821 = vtanh.f32 %v1126_v31 }
 0x320   :  { %v3816_v62 = vpop.eup %3815 }
 0x321   :  { %v1133_v24 = vsub.f32 %v4511_v36, %v3816_v62 }
 0x322   :  { %v3818_v54 = vpop.eup %3817 }
 0x323   :  { %1142 = vrot.lane.b32.xlu1 %v1133_v24, %s3977_s13  ;;  %v1132_v2 = vsub.f32 %v4505_v20, %v3818_v54 }
 0x324   :  { %v3820_v52 = vpop.eup %3819 }
 0x325   :  { %1140 = vrot.lane.b32.xlu0 %v1132_v2, %s3977_s13  ;;  %v1135_v5 = vsub.f32 %v4523_v47, %v3820_v52 }
 0x326   :  { %v3822_v57 = vpop.eup %3821 }
 0x327   :  { %1146 = vrot.lane.b32.xlu1 %v1135_v5, %s3977_s13  ;;  %v1134_v8 = vsub.f32 %v4513_v44, %v3822_v57 }
 0x329   :  { %1144 = vrot.lane.b32.xlu0 %v1134_v8, %s3977_s13 }
 0x395   :  { %v1143_v16 = vpop.permute.xlu1 %1142 }
 0x396   :  { %v1153_v39 = vmul.f32 %v3808_v50, %v1143_v16 }
 0x397   :  { %v1141_v36 = vpop.permute.xlu0 %1140 }
 0x398   :  { %v1152_v32 = vmul.f32 %v3810_v28, %v1141_v36  ;;  %1162 = vrot.lane.b32.xlu1 %v1153_v39, %s3978_s14 }
 0x399   :  { %v1147_v61 = vpop.permute.xlu1 %1146 }
 0x39a   :  { %v1155_v20 = vmul.f32 %v3812_v59, %v1147_v61  ;;  %1160 = vrot.lane.b32.xlu0 %v1152_v32, %s3978_s14 }
 0x39b   :  { %v1145_v60 = vpop.permute.xlu0 %1144 }
 0x39c   :  { %v1154_v45 = vmul.f32 %v3814_v46, %v1145_v60  ;;  %1166 = vrot.lane.b32.xlu1 %v1155_v20, %s3978_s14 }
 0x39e   :  { %1164 = vrot.lane.b32.xlu0 %v1154_v45, %s3978_s14 }
 0x40a   :  { %v1163_v47 = vpop.permute.xlu1 %1162 }
 0x40b   :  { %v4571_v9 = vadd.f32 %v3816_v62, %v1163_v47 }
 0x40c   :  { %v1161_v44 = vpop.permute.xlu0 %1160 }
 0x40d   :  { %v4569_v23 = vadd.f32 %v3818_v54, %v1161_v44 }
 0x40e   :  { %v1167_v50 = vpop.permute.xlu1 %1166 }
 0x40f   :  { %3584 = vmatprep.mubr.msk.f32.mxu0 %vm652_vm2, %v4569_v23  ;;  %3598 = vmatprep.mubr.msk.f32.mxu1 %vm652_vm2, %v4569_v23  ;;  %v4585_v56 = vadd.f32 %v3820_v52, %v1167_v50 }
 0x410   :  { %3585 = vmatmul.mubr.msk.f32.vlgmr.msra.gmra.mxu0 %vm652_vm2, %v4571_v9  ;;  %3599 = vmatmul.mubr.msk.f32.vlgmr.msra.gmra.mxu1 %vm652_vm2, %v4571_v9  ;;  %v1165_v28 = vpop.permute.xlu0 %1164 }
 0x411   :  { %v4581_v53 = vadd.f32 %v3822_v57, %v1165_v28  ;;  %3605 = vmatpush3.msra.mxu0 %v4051_v4  ;;  %3619 = vmatpush3.msra.mxu1 %v4090_v11 }
 0x412   :  { %3606 = vmatprep.subr.mxu0 %v4065_v6  ;;  %3620 = vmatprep.subr.mxu1 %v4109_v14 }
 0x413   :  { %3587 = vmatprep.mubr.msk.f32.mxu0 %vm652_vm2, %v4581_v53  ;;  %3601 = vmatprep.mubr.msk.f32.mxu1 %vm652_vm2, %v4581_v53 }
 0x414   :  { %3588 = vmatmul.mubr.msk.f32.gmra.mxu0 %vm652_vm2, %v4585_v56  ;;  %3602 = vmatmul.mubr.msk.f32.gmra.mxu1 %vm652_vm2, %v4585_v56 }
 0x415   :  { %3607 = vmatpush3.msra.mxu0 %v4065_v6  ;;  %3621 = vmatpush3.msra.mxu1 %v4109_v14 }
 0x416   :  { %3608 = vmatprep.subr.mxu0 %v4085_v10  ;;  %3622 = vmatprep.subr.mxu1 %v4126_v17 }
 0x417   :  { %3609 = vmatpush3.msra.mxu0 %v4085_v10  ;;  %3623 = vmatpush3.msra.mxu1 %v4126_v17 }
 0x418   :  { %3610 = vmatprep.subr.mxu0 %v4104_v13  ;;  %3624 = vmatprep.subr.mxu1 %v4138_v19 }
 0x419   :  { %3611 = vmatpush3.msra.mxu0 %v4104_v13  ;;  %3625 = vmatpush3.msra.mxu1 %v4138_v19 }
 0x41a   :  { %3632 = vmatprep.subr.mxu0 %v4051_v4  ;;  %3646 = vmatprep.subr.mxu1 %v4090_v11 }
 0x4d0   :  { %v3586_v6 = vpop.f32.mrf.mxu0  ;;  %v3600_v24 = vpop.f32.mrf.mxu1 }
 0x4d1   :  { %v1359_v14 = vadd.f32 %v3586_v6, %v4320_v1 }
 0x4d2   :  { %v1254_v59 = vpop.f32.mrf.mxu0  ;;  %v1339_v54 = vpop.f32.mrf.mxu1 }
 0x4d3   :  { %v3139_v40 = vmul.f32 -1.442695, %v1359_v14  ;;  %v1358_v10 = vadd.f32 %v1254_v59, %v4326_v7  ;;  %v1340_v57 = vadd.f32 %v4483_v43, %v1339_v54  ;;  %v4692_v54 = vld [vmem:[%s5022_s4 + $0x8] sm:$0xff] }
 0x4d4   :  { %v3589_v17 = vpop.f32.mrf.mxu0  ;;  %v3603_v2 = vpop.f32.mrf.mxu1 }
 0x4d5   :  { %3823 = vpow2.f32 %v3139_v40  ;;  %v3138_v49 = vmul.f32 -1.442695, %v1358_v10  ;;  %v1361_v63 = vadd.f32 %v3589_v17, %v4332_v15  ;;  %v1355_v32 = vadd.f32 %v3603_v2, %v4483_v43  ;;  %v4700_v2 = vld [vmem:[%s5020_s3] sm:$0xff] }
 0x4d6   :  { %v1264_v46 = vpop.f32.mrf.mxu0  ;;  %v1349_v16 = vpop.f32.mrf.mxu1 }
 0x4d7   :  { %3825 = vpow2.f32 %v3138_v49  ;;  %v3141_v13 = vmul.f32 -1.442695, %v1361_v63  ;;  %v1360_v19 = vadd.f32 %v1264_v46, %v4338_v21  ;;  %v1345_v21 = vadd.f32 %v3600_v24, %v4483_v43  ;;  %v4670_v24 = vld [vmem:[%s5022_s4 + $0x10] sm:$0xff] }
 0x4d8   :  { %v1350_v45 = vadd.f32 %v4483_v43, %v1349_v16 }
 0x4d9   :  { %3827 = vpow2.f32 %v3141_v13  ;;  %v3140_v4 = vmul.f32 -1.442695, %v1360_v19 }
 0x4db   :  { %3829 = vpow2.f32 %v3140_v4 }
 0x4e2   :  { %v3824_v11 = vpop.eup %3823 }
 0x4e3   :  { %v1375_v48 = vadd.f32 1.0, %v3824_v11 }
 0x4e4   :  { %v3826_v1 = vpop.eup %3825 }
 0x4e5   :  { %3831 = vrcp.f32 %v1375_v48  ;;  %v1374_v51 = vadd.f32 1.0, %v3826_v1 }
 0x4e6   :  { %v3828_v31 = vpop.eup %3827 }
 0x4e7   :  { %3833 = vrcp.f32 %v1374_v51  ;;  %v1377_v7 = vadd.f32 1.0, %v3828_v31  ;;  %v4650_v51 = vld [vmem:[%s5020_s3 + $0x18] sm:$0xff] }
 0x4e8   :  { %v3830_v62 = vpop.eup %3829  ;;  %v4656_v31 = vld [vmem:[%s5022_s4 + $0x18] sm:$0xff] }
 0x4e9   :  { %3835 = vrcp.f32 %v1377_v7  ;;  %v1376_v15 = vadd.f32 1.0, %v3830_v62  ;;  %v4664_v62 = vld [vmem:[%s5020_s3 + $0x10] sm:$0xff] }
 0x4eb   :  { %3837 = vrcp.f32 %v1376_v15  ;;  %v4686_v15 = vld [vmem:[%s5020_s3 + $0x8] sm:$0xff] }
 0x4f2   :  { %v3832_v52 = vpop.eup %3831 }
 0x4f3   :  { %v1387_v5 = vmul.f32 %v3832_v52, %v1345_v21  ;;  %v4706_v21 = vld [vmem:[%s5022_s4] sm:$0xff] }
 0x4f4   :  { %v3834_v8 = vpop.eup %3833 }
 0x4f5   :  { %v1391_v39 = vadd.f32 %v1387_v5, %v4341_v22  ;;  %v1386_v36 = vmul.f32 %v3834_v8, %v1340_v57 }
 0x4f6   :  { %v3836_v61 = vpop.eup %3835 }
 0x4f7   :  { %3839 = vtanh.f32 %v1391_v39  ;;  %v1390_v20 = vadd.f32 %v1386_v36, %v4347_v26  ;;  %v1389_v60 = vmul.f32 %v3836_v61, %v1355_v32 }
 0x4f8   :  { %v3838_v47 = vpop.eup %3837 }
 0x4f9   :  { %3841 = vtanh.f32 %v1390_v20  ;;  %v1393_v44 = vadd.f32 %v1389_v60, %v4353_v30  ;;  %v1388_v50 = vmul.f32 %v3838_v47, %v1350_v45 }
 0x4fb   :  { %3843 = vtanh.f32 %v1393_v44  ;;  %v1392_v28 = vadd.f32 %v1388_v50, %v4359_v34 }
 0x4fd   :  { %3845 = vtanh.f32 %v1392_v28 }
 0x504   :  { %v3840_v22 = vpop.eup %3839 }
 0x505   :  { %v1399_v6 = vsub.f32 %v4571_v9, %v3840_v22 }
 0x506   :  { %v3842_v14 = vpop.eup %3841 }
 0x507   :  { %1408 = vrot.lane.b32.xlu1 %v1399_v6, %s3977_s13  ;;  %v1398_v26 = vsub.f32 %v4569_v23, %v3842_v14 }
 0x508   :  { %v3844_v59 = vpop.eup %3843 }
 0x509   :  { %1406 = vrot.lane.b32.xlu0 %v1398_v26, %s3977_s13  ;;  %v1401_v40 = vsub.f32 %v4585_v56, %v3844_v59 }
 0x50a   :  { %v3846_v10 = vpop.eup %3845 }
 0x50b   :  { %1412 = vrot.lane.b32.xlu1 %v1401_v40, %s3977_s13  ;;  %v1400_v30 = vsub.f32 %v4581_v53, %v3846_v10 }
 0x50d   :  { %1410 = vrot.lane.b32.xlu0 %v1400_v30, %s3977_s13 }
 0x579   :  { %v1409_v34 = vpop.permute.xlu1 %1408 }
 0x57a   :  { %v1419_v17 = vmul.f32 %v3832_v52, %v1409_v34 }
 0x57b   :  { %v1407_v9 = vpop.permute.xlu0 %1406 }
 0x57c   :  { %v1418_v49 = vmul.f32 %v3834_v8, %v1407_v9  ;;  %1428 = vrot.lane.b32.xlu1 %v1419_v17, %s3978_s14 }
 0x57d   :  { %v1413_v63 = vpop.permute.xlu1 %1412 }
 0x57e   :  { %v1421_v23 = vmul.f32 %v3836_v61, %v1413_v63  ;;  %1426 = vrot.lane.b32.xlu0 %v1418_v49, %s3978_s14 }
 0x57f   :  { %v1411_v46 = vpop.permute.xlu0 %1410 }
 0x580   :  { %v1420_v13 = vmul.f32 %v3838_v47, %v1411_v46  ;;  %1432 = vrot.lane.b32.xlu1 %v1421_v23, %s3978_s14 }
 0x582   :  { %1430 = vrot.lane.b32.xlu0 %v1420_v13, %s3978_s14 }
 0x5ee   :  { %v1429_v56 = vpop.permute.xlu1 %1428 }
 0x5ef   :  { %v4635_v4 = vadd.f32 %v3840_v22, %v1429_v56 }
 0x5f0   :  { %v1427_v53 = vpop.permute.xlu0 %1426 }
 0x5f1   :  { %v4633_v19 = vadd.f32 %v3842_v14, %v1427_v53 }
 0x5f2   :  { %v1433_v11 = vpop.permute.xlu1 %1432 }
 0x5f3   :  { %3612 = vmatprep.mubr.msk.f32.mxu0 %vm652_vm2, %v4633_v19  ;;  %3626 = vmatprep.mubr.msk.f32.mxu1 %vm652_vm2, %v4633_v19  ;;  %v4659_v7 = vadd.f32 %v3844_v59, %v1433_v11 }
 0x5f4   :  { %3613 = vmatmul.mubr.msk.f32.vlgmr.msra.gmra.mxu0 %vm652_vm2, %v4635_v4  ;;  %3627 = vmatmul.mubr.msk.f32.vlgmr.msra.gmra.mxu1 %vm652_vm2, %v4635_v4  ;;  %v1431_v48 = vpop.permute.xlu0 %1430 }
 0x5f5   :  { %v4645_v1 = vadd.f32 %v3846_v10, %v1431_v48  ;;  %3633 = vmatpush3.msra.mxu0 %v4650_v51  ;;  %3647 = vmatpush3.msra.mxu1 %v4656_v31 }
 0x5f6   :  { %3634 = vmatprep.subr.mxu0 %v4664_v62  ;;  %3648 = vmatprep.subr.mxu1 %v4670_v24 }
 0x5f7   :  { %3615 = vmatprep.mubr.msk.f32.mxu0 %vm652_vm2, %v4645_v1  ;;  %3629 = vmatprep.mubr.msk.f32.mxu1 %vm652_vm2, %v4645_v1 }
 0x5f8   :  { %3616 = vmatmul.mubr.msk.f32.gmra.mxu0 %vm652_vm2, %v4659_v7  ;;  %3630 = vmatmul.mubr.msk.f32.gmra.mxu1 %vm652_vm2, %v4659_v7 }
 0x5f9   :  { %3635 = vmatpush3.msra.mxu0 %v4664_v62  ;;  %3649 = vmatpush3.msra.mxu1 %v4670_v24 }
 0x5fa   :  { %3636 = vmatprep.subr.mxu0 %v4686_v15  ;;  %3650 = vmatprep.subr.mxu1 %v4692_v54 }
 0x5fb   :  { %3637 = vmatpush3.msra.mxu0 %v4686_v15  ;;  %3651 = vmatpush3.msra.mxu1 %v4692_v54 }
 0x5fc   :  { %3638 = vmatprep.subr.mxu0 %v4700_v2  ;;  %3652 = vmatprep.subr.mxu1 %v4706_v21 }
 0x5fd   :  { %3639 = vmatpush3.msra.mxu0 %v4700_v2  ;;  %3653 = vmatpush3.msra.mxu1 %v4706_v21 }
 0x5fe   :  { %3660 = vmatprep.subr.mxu0 %v4650_v51  ;;  %3674 = vmatprep.subr.mxu1 %v4656_v31 }
 0x6b4   :  { %v3614_v52 = vpop.f32.mrf.mxu0  ;;  %v3628_v6 = vpop.f32.mrf.mxu1 }
 0x6b5   :  { %v1625_v5 = vadd.f32 %v3614_v52, %v4344_v25 }
 0x6b6   :  { %v1520_v57 = vpop.f32.mrf.mxu0  ;;  %v1605_v14 = vpop.f32.mrf.mxu1 }
 0x6b7   :  { %v3151_v8 = vmul.f32 -1.442695, %v1625_v5  ;;  %v1624_v16 = vadd.f32 %v1520_v57, %v4350_v29  ;;  %v1606_v10 = vadd.f32 %v4483_v43, %v1605_v14 }
 0x6b8   :  { %v3617_v39 = vpop.f32.mrf.mxu0  ;;  %v3631_v26 = vpop.f32.mrf.mxu1 }
 0x6b9   :  { %3847 = vpow2.f32 %v3151_v8  ;;  %v3150_v36 = vmul.f32 -1.442695, %v1624_v16  ;;  %v1627_v32 = vadd.f32 %v3617_v39, %v4356_v33  ;;  %v1621_v49 = vadd.f32 %v3631_v26, %v4483_v43 }
 0x6ba   :  { %v1530_v61 = vpop.f32.mrf.mxu0  ;;  %v1615_v34 = vpop.f32.mrf.mxu1 }
 0x6bb   :  { %3849 = vpow2.f32 %v3150_v36  ;;  %v3153_v20 = vmul.f32 -1.442695, %v1627_v32  ;;  %v1626_v60 = vadd.f32 %v1530_v61, %v4362_v37  ;;  %v1611_v37 = vadd.f32 %v3628_v6, %v4483_v43 }
 0x6bc   :  { %v1616_v13 = vadd.f32 %v4483_v43, %v1615_v34 }
 0x6bd   :  { %3851 = vpow2.f32 %v3153_v20  ;;  %v3152_v45 = vmul.f32 -1.442695, %v1626_v60 }
 0x6bf   :  { %3853 = vpow2.f32 %v3152_v45 }
 0x6c6   :  { %v3848_v47 = vpop.eup %3847 }
 0x6c7   :  { %v1641_v44 = vadd.f32 1.0, %v3848_v47 }
 0x6c8   :  { %v3850_v25 = vpop.eup %3849 }
 0x6c9   :  { %3855 = vrcp.f32 %v1641_v44  ;;  %v1640_v50 = vadd.f32 1.0, %v3850_v25 }
 0x6ca   :  { %v3852_v28 = vpop.eup %3851 }
 0x6cb   :  { %3857 = vrcp.f32 %v1640_v50  ;;  %v1643_v29 = vadd.f32 1.0, %v3852_v28 }
 0x6cc   :  { %v3854_v22 = vpop.eup %3853 }
 0x6cd   :  { %3859 = vrcp.f32 %v1643_v29  ;;  %v1642_v33 = vadd.f32 1.0, %v3854_v22 }
 0x6cf   :  { %3861 = vrcp.f32 %v1642_v33 }
 0x6d6   :  { %v3856_v59 = vpop.eup %3855 }
 0x6d7   :  { %v1653_v40 = vmul.f32 %v3856_v59, %v1611_v37 }
 0x6d8   :  { %v3858_v30 = vpop.eup %3857 }
 0x6d9   :  { %v1657_v17 = vadd.f32 %v1653_v40, %v4365_v38  ;;  %v1652_v9 = vmul.f32 %v3858_v30, %v1606_v10 }
 0x6da   :  { %v3860_v63 = vpop.eup %3859 }
 0x6db   :  { %3863 = vtanh.f32 %v1657_v17  ;;  %v1656_v23 = vadd.f32 %v1652_v9, %v4371_v42  ;;  %v1655_v46 = vmul.f32 %v3860_v63, %v1621_v49 }
 0x6dc   :  { %v3862_v56 = vpop.eup %3861 }
 0x6dd   :  { %3865 = vtanh.f32 %v1656_v23  ;;  %v1659_v53 = vadd.f32 %v1655_v46, %v4377_v58  ;;  %v1654_v11 = vmul.f32 %v3862_v56, %v1616_v13 }
 0x6df   :  { %3867 = vtanh.f32 %v1659_v53  ;;  %v1658_v48 = vadd.f32 %v1654_v11, %v4383_v3 }
 0x6e1   :  { %3869 = vtanh.f32 %v1658_v48 }
 0x6e8   :  { %v3864_v38 = vpop.eup %3863 }
 0x6e9   :  { %v1665_v52 = vsub.f32 %v4635_v4, %v3864_v38 }
 0x6ea   :  { %v3866_v5 = vpop.eup %3865 }
 0x6eb   :  { %1674 = vrot.lane.b32.xlu1 %v1665_v52, %s3977_s13  ;;  %v1664_v42 = vsub.f32 %v4633_v19, %v3866_v5 }
 0x6ec   :  { %v3868_v57 = vpop.eup %3867 }
 0x6ed   :  { %1672 = vrot.lane.b32.xlu0 %v1664_v42, %s3977_s13  ;;  %v1667_v8 = vsub.f32 %v4659_v7, %v3868_v57 }
 0x6ee   :  { %v3870_v16 = vpop.eup %3869 }
 0x6ef   :  { %1678 = vrot.lane.b32.xlu1 %v1667_v8, %s3977_s13  ;;  %v1666_v58 = vsub.f32 %v4645_v1, %v3870_v16 }
 0x6f1   :  { %1676 = vrot.lane.b32.xlu0 %v1666_v58, %s3977_s13 }
 0x75d   :  { %v1675_v3 = vpop.permute.xlu1 %1674 }
 0x75e   :  { %v1685_v39 = vmul.f32 %v3856_v59, %v1675_v3 }
 0x75f   :  { %v1673_v4 = vpop.permute.xlu0 %1672 }
 0x760   :  { %v1684_v36 = vmul.f32 %v3858_v30, %v1673_v4  ;;  %1694 = vrot.lane.b32.xlu1 %v1685_v39, %s3978_s14 }
 0x761   :  { %v1679_v32 = vpop.permute.xlu1 %1678 }
 0x762   :  { %v1687_v19 = vmul.f32 %v3860_v63, %v1679_v32  ;;  %1692 = vrot.lane.b32.xlu0 %v1684_v36, %s3978_s14  ;;  %v5054_v36 = vld [vmem:[#allocation5_spill] sm:$0xff] }
 0x763   :  { %v1677_v61 = vpop.permute.xlu0 %1676 }
 0x764   :  { %v1686_v20 = vmul.f32 %v3862_v56, %v1677_v61  ;;  %1698 = vrot.lane.b32.xlu1 %v1687_v19, %s3978_s14 }
 0x766   :  { %1696 = vrot.lane.b32.xlu0 %v1686_v20, %s3978_s14 }
 0x7d2   :  { %v1695_v7 = vpop.permute.xlu1 %1694 }
 0x7d3   :  { %v4739_v45 = vadd.f32 %v3864_v38, %v1695_v7 }
 0x7d4   :  { %v1693_v1 = vpop.permute.xlu0 %1692 }
 0x7d5   :  { %v4737_v60 = vadd.f32 %v3866_v5, %v1693_v1 }
 0x7d6   :  { %v1699_v47 = vpop.permute.xlu1 %1698 }
 0x7d7   :  { %3640 = vmatprep.mubr.msk.f32.mxu0 %vm652_vm2, %v4737_v60  ;;  %3654 = vmatprep.mubr.msk.f32.mxu1 %vm652_vm2, %v4737_v60  ;;  %v4753_v50 = vadd.f32 %v3868_v57, %v1699_v47 }
 0x7d8   :  { %3641 = vmatmul.mubr.msk.f32.vlgmr.msra.gmra.mxu0 %vm652_vm2, %v4739_v45  ;;  %3655 = vmatmul.mubr.msk.f32.vlgmr.msra.gmra.mxu1 %vm652_vm2, %v4739_v45  ;;  %v1697_v44 = vpop.permute.xlu0 %1696 }
 0x7d9   :  { %v4749_v25 = vadd.f32 %v3870_v16, %v1697_v44  ;;  %3661 = vmatpush3.msra.mxu0 %v4650_v51  ;;  %3675 = vmatpush3.msra.mxu1 %v4656_v31 }
 0x7da   :  { %3662 = vmatprep.subr.mxu0 %v4664_v62  ;;  %3676 = vmatprep.subr.mxu1 %v4670_v24 }
 0x7db   :  { %3643 = vmatprep.mubr.msk.f32.mxu0 %vm652_vm2, %v4749_v25  ;;  %3657 = vmatprep.mubr.msk.f32.mxu1 %vm652_vm2, %v4749_v25 }
 0x7dc   :  { %3644 = vmatmul.mubr.msk.f32.gmra.mxu0 %vm652_vm2, %v4753_v50  ;;  %3658 = vmatmul.mubr.msk.f32.gmra.mxu1 %vm652_vm2, %v4753_v50 }
 0x7dd   :  { %3663 = vmatpush3.msra.mxu0 %v4664_v62  ;;  %3677 = vmatpush3.msra.mxu1 %v4670_v24 }
 0x7de   :  { %3664 = vmatprep.subr.mxu0 %v4686_v15  ;;  %3678 = vmatprep.subr.mxu1 %v4692_v54 }
 0x7df   :  { %3665 = vmatpush3.msra.mxu0 %v4686_v15  ;;  %3679 = vmatpush3.msra.mxu1 %v4692_v54 }
 0x7e0   :  { %3666 = vmatprep.subr.mxu0 %v4700_v2  ;;  %3680 = vmatprep.subr.mxu1 %v4706_v21 }
 0x7e1   :  { %3667 = vmatpush3.msra.mxu0 %v4700_v2  ;;  %3681 = vmatpush3.msra.mxu1 %v4706_v21 }
 0x7e2   :  { %3688 = vmatprep.subr.mxu0 %v4650_v51  ;;  %3702 = vmatprep.subr.mxu1 %v4656_v31 }
 0x898   :  { %v3642_v28 = vpop.f32.mrf.mxu0  ;;  %v3656_v23 = vpop.f32.mrf.mxu1 }
 0x899   :  { %v1891_v29 = vadd.f32 %v3642_v28, %v4368_v41 }
 0x89a   :  { %v1786_v22 = vpop.f32.mrf.mxu0  ;;  %v1871_v46 = vpop.f32.mrf.mxu1 }
 0x89b   :  { %v3163_v6 = vmul.f32 -1.442695, %v1891_v29  ;;  %v1890_v33 = vadd.f32 %v1786_v22, %v4374_v55  ;;  %v1872_v11 = vadd.f32 %v4483_v43, %v1871_v46 }
 0x89c   :  { %v3645_v14 = vpop.f32.mrf.mxu0  ;;  %v3659_v13 = vpop.f32.mrf.mxu1 }
 0x89d   :  { %3871 = vpow2.f32 %v3163_v6  ;;  %v3162_v26 = vmul.f32 -1.442695, %v1890_v33  ;;  %v1893_v37 = vadd.f32 %v3645_v14, %v4380_v0  ;;  %v1887_v42 = vadd.f32 %v3659_v13, %v4483_v43  ;;  %v5058_v13 = vld [vmem:[#allocation6_spill] sm:$0xff] }
 0x89e   :  { %v1796_v59 = vpop.f32.mrf.mxu0  ;;  %v1881_v38 = vpop.f32.mrf.mxu1 }
 0x89f   :  { %3873 = vpow2.f32 %v3162_v26  ;;  %v3165_v40 = vmul.f32 -1.442695, %v1893_v37  ;;  %v1892_v10 = vadd.f32 %v1796_v59, %v4386_v12  ;;  %v1877_v12 = vadd.f32 %v3656_v23, %v4483_v43 }
 0x8a0   :  { %v1882_v58 = vadd.f32 %v4483_v43, %v1881_v38 }
 0x8a1   :  { %3875 = vpow2.f32 %v3165_v40  ;;  %v3164_v30 = vmul.f32 -1.442695, %v1892_v10  ;;  %v5055_v10 = vld [vmem:[#allocation2_spill] sm:$0xff] }
 0x8a3   :  { %3877 = vpow2.f32 %v3164_v30 }
 0x8aa   :  { %v3872_v34 = vpop.eup %3871 }
 0x8ab   :  { %v1907_v17 = vadd.f32 1.0, %v3872_v34 }
 0x8ac   :  { %v3874_v41 = vpop.eup %3873 }
 0x8ad   :  { %3879 = vrcp.f32 %v1907_v17  ;;  %v1906_v9 = vadd.f32 1.0, %v3874_v41  ;;  %v5056_v41 = vld [vmem:[#allocation3_spill] sm:$0xff] }
 0x8ae   :  { %v3876_v49 = vpop.eup %3875 }
 0x8af   :  { %3881 = vrcp.f32 %v1906_v9  ;;  %v1909_v55 = vadd.f32 1.0, %v3876_v49 }
 0x8b0   :  { %v3878_v63 = vpop.eup %3877 }
 0x8b1   :  { %3883 = vrcp.f32 %v1909_v55  ;;  %v1908_v0 = vadd.f32 1.0, %v3878_v63  ;;  %v5057_v63 = vld [vmem:[#allocation4_spill] sm:$0xff] }
 0x8b3   :  { %3885 = vrcp.f32 %v1908_v0 }
 0x8ba   :  { %v3880_v56 = vpop.eup %3879 }
 0x8bb   :  { %v1919_v53 = vmul.f32 %v3880_v56, %v1877_v12 }
 0x8bc   :  { %v3882_v48 = vpop.eup %3881 }
 0x8bd   :  { %v1923_v52 = vadd.f32 %v1919_v53, %v4389_v18  ;;  %v1918_v5 = vmul.f32 %v3882_v48, %v1872_v11 }
 0x8be   :  { %v3884_v57 = vpop.eup %3883 }
 0x8bf   :  { %3887 = vtanh.f32 %v1923_v52  ;;  %v1922_v8 = vadd.f32 %v1918_v5, %v4395_v27  ;;  %v1921_v16 = vmul.f32 %v3884_v57, %v1887_v42 }
 0x8c0   :  { %v3886_v3 = vpop.eup %3885 }
 0x8c1   :  { %3889 = vtanh.f32 %v1922_v8  ;;  %v1925_v39 = vadd.f32 %v1921_v16, %v4401_v35  ;;  %v1920_v4 = vmul.f32 %v3886_v3, %v1882_v58 }
 0x8c3   :  { %3891 = vtanh.f32 %v1925_v39  ;;  %v1924_v32 = vadd.f32 %v1920_v4, %v5054_v36 }
 0x8c5   :  { %3893 = vtanh.f32 %v1924_v32 }
 0x8cc   :  { %v3888_v18 = vpop.eup %3887 }
 0x8cd   :  { %v1931_v19 = vsub.f32 %v4739_v45, %v3888_v18 }
 0x8ce   :  { %v3890_v61 = vpop.eup %3889 }
 0x8cf   :  { %1940 = vrot.lane.b32.xlu1 %v1931_v19, %s3977_s13  ;;  %v1930_v27 = vsub.f32 %v4737_v60, %v3890_v61 }
 0x8d0   :  { %v3892_v20 = vpop.eup %3891 }
 0x8d1   :  { %1938 = vrot.lane.b32.xlu0 %v1930_v27, %s3977_s13  ;;  %v1933_v43 = vsub.f32 %v4753_v50, %v3892_v20 }
 0x8d2   :  { %v3894_v7 = vpop.eup %3893 }
 0x8d3   :  { %1944 = vrot.lane.b32.xlu1 %v1933_v43, %s3977_s13  ;;  %v1932_v35 = vsub.f32 %v4749_v25, %v3894_v7 }
 0x8d5   :  { %1942 = vrot.lane.b32.xlu0 %v1932_v35, %s3977_s13  ;;  %v5060_v35 = vld [vmem:[#allocation9_spill] sm:$0xff] }
 0x941   :  { %v1941_v1 = vpop.permute.xlu1 %1940 }
 0x942   :  { %v1951_v47 = vmul.f32 %v3880_v56, %v1941_v1 }
 0x943   :  { %v1939_v45 = vpop.permute.xlu0 %1938 }
 0x944   :  { %v1950_v44 = vmul.f32 %v3882_v48, %v1939_v45  ;;  %1960 = vrot.lane.b32.xlu1 %v1951_v47, %s3978_s14 }
 0x945   :  { %v1945_v28 = vpop.permute.xlu1 %1944 }
 0x946   :  { %v1953_v60 = vmul.f32 %v3884_v57, %v1945_v28  ;;  %1958 = vrot.lane.b32.xlu0 %v1950_v44, %s3978_s14  ;;  %v5061_v28 = vld [vmem:[#allocation11_spill] sm:$0xff] }
 0x947   :  { %v1943_v29 = vpop.permute.xlu0 %1942 }
 0x948   :  { %v1952_v22 = vmul.f32 %v3886_v3, %v1943_v29  ;;  %1964 = vrot.lane.b32.xlu1 %v1953_v60, %s3978_s14  ;;  %v4848_v3 = vld [vmem:[%s5025_s7] ss:$0 sm:$0xff] }
 0x94a   :  { %1962 = vrot.lane.b32.xlu0 %v1952_v22, %s3978_s14  ;;  %v5062_v22 = vld [vmem:[#allocation13_spill] sm:$0xff] }
 0x9b6   :  { %v1961_v50 = vpop.permute.xlu1 %1960 }
 0x9b7   :  { %v4803_v33 = vadd.f32 %v3888_v18, %v1961_v50 }
 0x9b8   :  { %v1959_v25 = vpop.permute.xlu0 %1958 }
 0x9b9   :  { %v4801_v6 = vadd.f32 %v3890_v61, %v1959_v25  ;;  %v5059_v61 = vld [vmem:[#allocation7_spill] sm:$0xff] }
 0x9ba   :  { %v1965_v14 = vpop.permute.xlu1 %1964 }
 0x9bb   :  { %3668 = vmatprep.mubr.msk.f32.mxu0 %vm652_vm2, %v4801_v6  ;;  %3682 = vmatprep.mubr.msk.f32.mxu1 %vm652_vm2, %v4801_v6  ;;  %v4817_v59 = vadd.f32 %v3892_v20, %v1965_v14 }
 0x9bc   :  { %3669 = vmatmul.mubr.msk.f32.vlgmr.msra.gmra.mxu0 %vm652_vm2, %v4803_v33  ;;  %3683 = vmatmul.mubr.msk.f32.vlgmr.msra.gmra.mxu1 %vm652_vm2, %v4803_v33  ;;  %v1963_v26 = vpop.permute.xlu0 %1962 }
 0x9bd   :  { %v4813_v37 = vadd.f32 %v3894_v7, %v1963_v26  ;;  %3689 = vmatpush3.msra.mxu0 %v4650_v51  ;;  %3703 = vmatpush3.msra.mxu1 %v4656_v31 }
 0x9be   :  { %3690 = vmatprep.subr.mxu0 %v4664_v62  ;;  %3704 = vmatprep.subr.mxu1 %v4670_v24 }
 0x9bf   :  { %3671 = vmatprep.mubr.msk.f32.mxu0 %vm652_vm2, %v4813_v37  ;;  %3685 = vmatprep.mubr.msk.f32.mxu1 %vm652_vm2, %v4813_v37 }
 0x9c0   :  { %3672 = vmatmul.mubr.msk.f32.gmra.mxu0 %vm652_vm2, %v4817_v59  ;;  %3686 = vmatmul.mubr.msk.f32.gmra.mxu1 %vm652_vm2, %v4817_v59 }
 0x9c1   :  { %3691 = vmatpush3.msra.mxu0 %v4664_v62  ;;  %3705 = vmatpush3.msra.mxu1 %v4670_v24 }
 0x9c2   :  { %3692 = vmatprep.subr.mxu0 %v4686_v15  ;;  %3706 = vmatprep.subr.mxu1 %v4692_v54 }
 0x9c3   :  { %3693 = vmatpush3.msra.mxu0 %v4686_v15  ;;  %3707 = vmatpush3.msra.mxu1 %v4692_v54 }
 0x9c4   :  { %3694 = vmatprep.subr.mxu0 %v4700_v2  ;;  %3708 = vmatprep.subr.mxu1 %v4706_v21 }
 0x9c5   :  { %3695 = vmatpush3.msra.mxu0 %v4700_v2  ;;  %3709 = vmatpush3.msra.mxu1 %v4706_v21 }
 0x9c6   :  { %3716 = vmatprep.subr.mxu0 %v4650_v51  ;;  %3730 = vmatprep.subr.mxu1 %v4656_v31 }
 0xa7c   :  { %v3670_v40 = vpop.f32.mrf.mxu0  ;;  %v3684_v57 = vpop.f32.mrf.mxu1 }
 0xa7d   :  { %v2157_v30 = vadd.f32 %v3670_v40, %v5055_v10  ;;  %v2143_v39 = vadd.f32 %v4848_v3, %v3684_v57 }
 0xa7e   :  { %v2052_v34 = vpop.f32.mrf.mxu0  ;;  %v2137_v16 = vpop.f32.mrf.mxu1 }
 0xa7f   :  { %v3175_v17 = vmul.f32 -1.442695, %v2157_v30  ;;  %v2156_v9 = vadd.f32 %v2052_v34, %v5056_v41  ;;  %v2138_v32 = vadd.f32 %v4848_v3, %v2137_v16 }
 0xa80   :  { %v3673_v49 = vpop.f32.mrf.mxu0  ;;  %v3687_v58 = vpop.f32.mrf.mxu1 }
 0xa81   :  { %3895 = vpow2.f32 %v3175_v17  ;;  %v3174_v55 = vmul.f32 -1.442695, %v2156_v9  ;;  %v2159_v23 = vadd.f32 %v3673_v49, %v5057_v63  ;;  %v2153_v43 = vadd.f32 %v4848_v3, %v3687_v58 }
 0xa82   :  { %v2062_v0 = vpop.f32.mrf.mxu0  ;;  %v2147_v19 = vpop.f32.mrf.mxu1 }
 0xa83   :  { %3897 = vpow2.f32 %v3174_v55  ;;  %v3177_v46 = vmul.f32 -1.442695, %v2159_v23  ;;  %v2158_v12 = vadd.f32 %v2062_v0, %v5058_v13  ;;  %v2148_v45 = vadd.f32 %v4848_v3, %v2147_v19 }
 0xa85   :  { %3899 = vpow2.f32 %v3177_v46  ;;  %v3176_v56 = vmul.f32 -1.442695, %v2158_v12 }
 0xa87   :  { %3901 = vpow2.f32 %v3176_v56 }
 0xa8e   :  { %v3896_v53 = vpop.eup %3895 }
 0xa8f   :  { %v2173_v11 = vadd.f32 1.0, %v3896_v53 }
 0xa90   :  { %v3898_v48 = vpop.eup %3897 }
 0xa91   :  { %3903 = vrcp.f32 %v2173_v11  ;;  %v2172_v38 = vadd.f32 1.0, %v3898_v48  ;;  %v5064_v48 = vld [vmem:[#allocation10_spill] sm:$0xff] }
 0xa92   :  { %v3900_v52 = vpop.eup %3899 }
 0xa93   :  { %3905 = vrcp.f32 %v2172_v38  ;;  %v2175_v5 = vadd.f32 1.0, %v3900_v52 }
 0xa94   :  { %v3902_v42 = vpop.eup %3901 }
 0xa95   :  { %3907 = vrcp.f32 %v2175_v5  ;;  %v2174_v8 = vadd.f32 1.0, %v3902_v42  ;;  %v5065_v5 = vld [vmem:[#allocation12_spill] sm:$0xff] }
 0xa97   :  { %3909 = vrcp.f32 %v2174_v8  ;;  %v5066_v8 = vld [vmem:[#allocation14_spill] sm:$0xff] }
 0xa9e   :  { %v3904_v4 = vpop.eup %3903 }
 0xa9f   :  { %v2185_v36 = vmul.f32 %v3904_v4, %v2143_v39 }
 0xaa0   :  { %v3906_v18 = vpop.eup %3905 }
 0xaa1   :  { %v2189_v27 = vadd.f32 %v2185_v36, %v5059_v61  ;;  %v2184_v20 = vmul.f32 %v3906_v18, %v2138_v32 }
 0xaa2   :  { %v3908_v7 = vpop.eup %3907 }
 0xaa3   :  { %3911 = vtanh.f32 %v2189_v27  ;;  %v2188_v1 = vadd.f32 %v2184_v20, %v5060_v35  ;;  %v2187_v47 = vmul.f32 %v3908_v7, %v2153_v43 }
 0xaa4   :  { %v3910_v44 = vpop.eup %3909 }
 0xaa5   :  { %3913 = vtanh.f32 %v2188_v1  ;;  %v2191_v60 = vadd.f32 %v2187_v47, %v5061_v28  ;;  %v2186_v29 = vmul.f32 %v3910_v44, %v2148_v45 }
 0xaa7   :  { %3915 = vtanh.f32 %v2191_v60  ;;  %v2190_v50 = vadd.f32 %v2186_v29, %v5062_v22 }
 0xaa9   :  { %3917 = vtanh.f32 %v2190_v50  ;;  %v5068_v50 = vld [vmem:[#allocation17_spill] sm:$0xff] }
 0xab0   :  { %v3912_v25 = vpop.eup %3911 }
 0xab1   :  { %v2197_v14 = vsub.f32 %v4803_v33, %v3912_v25 }
 0xab2   :  { %v3914_v26 = vpop.eup %3913 }
 0xab3   :  { %2206 = vrot.lane.b32.xlu1 %v2197_v14, %s3977_s13  ;;  %v2196_v40 = vsub.f32 %v4801_v6, %v3914_v26 }
 0xab4   :  { %v3916_v10 = vpop.eup %3915 }
 0xab5   :  { %2204 = vrot.lane.b32.xlu0 %v2196_v40, %s3977_s13  ;;  %v2199_v30 = vsub.f32 %v4817_v59, %v3916_v10 }
 0xab6   :  { %v3918_v34 = vpop.eup %3917 }
 0xab7   :  { %2210 = vrot.lane.b32.xlu1 %v2199_v30, %s3977_s13  ;;  %v2198_v17 = vsub.f32 %v4813_v37, %v3918_v34 }
 0xab9   :  { %2208 = vrot.lane.b32.xlu0 %v2198_v17, %s3977_s13  ;;  %v5070_v17 = vld [vmem:[#allocation21_spill] sm:$0xff] }
 0xb25   :  { %v2207_v41 = vpop.permute.xlu1 %2206 }
 0xb26   :  { %v2217_v9 = vmul.f32 %v3904_v4, %v2207_v41 }
 0xb27   :  { %v2205_v33 = vpop.permute.xlu0 %2204 }
 0xb28   :  { %v2216_v49 = vmul.f32 %v3906_v18, %v2205_v33  ;;  %2226 = vrot.lane.b32.xlu1 %v2217_v9, %s3978_s14 }
 0xb29   :  { %v2211_v55 = vpop.permute.xlu1 %2210 }
 0xb2a   :  { %v2219_v6 = vmul.f32 %v3908_v7, %v2211_v55  ;;  %2224 = vrot.lane.b32.xlu0 %v2216_v49, %s3978_s14 }
 0xb2b   :  { %v2209_v63 = vpop.permute.xlu0 %2208 }
 0xb2c   :  { %v2218_v23 = vmul.f32 %v3910_v44, %v2209_v63  ;;  %2230 = vrot.lane.b32.xlu1 %v2219_v6, %s3978_s14  ;;  %v5067_v44 = vld [vmem:[#allocation15_spill] sm:$0xff] }
 0xb2e   :  { %2228 = vrot.lane.b32.xlu0 %v2218_v23, %s3978_s14 }
 0xb9a   :  { %v2227_v59 = vpop.permute.xlu1 %2226 }
 0xb9b   :  { %v4872_v46 = vadd.f32 %v3912_v25, %v2227_v59 }
 0xb9c   :  { %v2225_v37 = vpop.permute.xlu0 %2224 }
 0xb9d   :  { %v4870_v0 = vadd.f32 %v3914_v26, %v2225_v37 }
 0xb9e   :  { %v2231_v13 = vpop.permute.xlu1 %2230 }
 0xb9f   :  { %3696 = vmatprep.mubr.msk.f32.mxu0 %vm652_vm2, %v4870_v0  ;;  %3710 = vmatprep.mubr.msk.f32.mxu1 %vm652_vm2, %v4870_v0  ;;  %v4886_v53 = vadd.f32 %v3916_v10, %v2231_v13  ;;  %v5069_v10 = vld [vmem:[#allocation19_spill] sm:$0xff] }
 0xba0   :  { %3697 = vmatmul.mubr.msk.f32.vlgmr.msra.gmra.mxu0 %vm652_vm2, %v4872_v46  ;;  %3711 = vmatmul.mubr.msk.f32.vlgmr.msra.gmra.mxu1 %vm652_vm2, %v4872_v46  ;;  %v2229_v12 = vpop.permute.xlu0 %2228 }
 0xba1   :  { %v4882_v56 = vadd.f32 %v3918_v34, %v2229_v12  ;;  %3717 = vmatpush3.msra.mxu0 %v4650_v51  ;;  %3731 = vmatpush3.msra.mxu1 %v4656_v31  ;;  %v5063_v31 = vld [vmem:[#allocation8_spill] sm:$0xff] }
 0xba2   :  { %3718 = vmatprep.subr.mxu0 %v4664_v62  ;;  %3732 = vmatprep.subr.mxu1 %v4670_v24 }
 0xba3   :  { %3699 = vmatprep.mubr.msk.f32.mxu0 %vm652_vm2, %v4882_v56  ;;  %3713 = vmatprep.mubr.msk.f32.mxu1 %vm652_vm2, %v4882_v56 }
 0xba4   :  { %3700 = vmatmul.mubr.msk.f32.gmra.mxu0 %vm652_vm2, %v4886_v53  ;;  %3714 = vmatmul.mubr.msk.f32.gmra.mxu1 %vm652_vm2, %v4886_v53 }
 0xba5   :  { %3719 = vmatpush3.msra.mxu0 %v4664_v62  ;;  %3733 = vmatpush3.msra.mxu1 %v4670_v24 }
 0xba6   :  { %3720 = vmatprep.subr.mxu0 %v4686_v15  ;;  %3734 = vmatprep.subr.mxu1 %v4692_v54 }
 0xba7   :  { %3721 = vmatpush3.msra.mxu0 %v4686_v15  ;;  %3735 = vmatpush3.msra.mxu1 %v4692_v54 }
 0xba8   :  { %3722 = vmatprep.subr.mxu0 %v4700_v2  ;;  %3736 = vmatprep.subr.mxu1 %v4706_v21 }
 0xba9   :  { %3723 = vmatpush3.msra.mxu0 %v4700_v2  ;;  %3737 = vmatpush3.msra.mxu1 %v4706_v21 }
 0xc60   :  { %v3698_v51 = vpop.f32.mrf.mxu0  ;;  %v3712_v19 = vpop.f32.mrf.mxu1 }
 0xc61   :  { %v2423_v62 = vadd.f32 %v3698_v51, %v5063_v31  ;;  %v2409_v43 = vadd.f32 %v4848_v3, %v3712_v19 }
 0xc62   :  { %v2318_v24 = vpop.f32.mrf.mxu0  ;;  %v2403_v27 = vpop.f32.mrf.mxu1 }
 0xc63   :  { %v3187_v11 = vmul.f32 -1.442695, %v2423_v62  ;;  %v2422_v38 = vadd.f32 %v2318_v24, %v5064_v48  ;;  %v2404_v1 = vadd.f32 %v4848_v3, %v2403_v27 }
 0xc64   :  { %v3701_v52 = vpop.f32.mrf.mxu0  ;;  %v3715_v20 = vpop.f32.mrf.mxu1 }
 0xc65   :  { %3919 = vpow2.f32 %v3187_v11  ;;  %v3186_v15 = vmul.f32 -1.442695, %v2422_v38  ;;  %v2425_v54 = vadd.f32 %v3701_v52, %v5065_v5  ;;  %v2419_v29 = vadd.f32 %v4848_v3, %v3715_v20 }
 0xc66   :  { %v2328_v42 = vpop.f32.mrf.mxu0  ;;  %v2413_v45 = vpop.f32.mrf.mxu1 }
 0xc67   :  { %3921 = vpow2.f32 %v3186_v15  ;;  %v3189_v57 = vmul.f32 -1.442695, %v2425_v54  ;;  %v2424_v16 = vadd.f32 %v2328_v42, %v5066_v8  ;;  %v2414_v26 = vadd.f32 %v4848_v3, %v2413_v45  ;;  %v5071_v54 = vld [vmem:[#allocation16_spill] sm:$0xff] }
 0xc69   :  { %3923 = vpow2.f32 %v3189_v57  ;;  %v3188_v2 = vmul.f32 -1.442695, %v2424_v16  ;;  %v5072_v16 = vld [vmem:[#allocation18_spill] sm:$0xff] }
 0xc6b   :  { %3925 = vpow2.f32 %v3188_v2 }
 0xc72   :  { %v3920_v21 = vpop.eup %3919 }
 0xc73   :  { %v2439_v58 = vadd.f32 1.0, %v3920_v21 }
 0xc74   :  { %v3922_v39 = vpop.eup %3921 }
 0xc75   :  { %3927 = vrcp.f32 %v2439_v58  ;;  %v2438_v4 = vadd.f32 1.0, %v3922_v39  ;;  %v5073_v39 = vld [vmem:[#allocation20_spill] sm:$0xff] }
 0xc76   :  { %v3924_v36 = vpop.eup %3923 }
 0xc77   :  { %3929 = vrcp.f32 %v2438_v4  ;;  %v2441_v32 = vadd.f32 1.0, %v3924_v36 }
 0xc78   :  { %v3926_v18 = vpop.eup %3925 }
 0xc79   :  { %3931 = vrcp.f32 %v2441_v32  ;;  %v2440_v61 = vadd.f32 1.0, %v3926_v18  ;;  %v5074_v18 = vld [vmem:[#allocation22_spill] sm:$0xff] }
 0xc7b   :  { %3933 = vrcp.f32 %v2440_v61 }
 0xc82   :  { %v3928_v7 = vpop.eup %3927 }
 0xc83   :  { %v2451_v35 = vmul.f32 %v3928_v7, %v2409_v43 }
 0xc84   :  { %v3930_v47 = vpop.eup %3929 }
 0xc85   :  { %v2455_v28 = vadd.f32 %v2451_v35, %v5067_v44  ;;  %v2450_v60 = vmul.f32 %v3930_v47, %v2404_v1 }
 0xc86   :  { %v3932_v22 = vpop.eup %3931 }
 0xc87   :  { %3935 = vtanh.f32 %v2455_v28  ;;  %v2454_v25 = vadd.f32 %v2450_v60, %v5068_v50  ;;  %v2453_v14 = vmul.f32 %v3932_v22, %v2419_v29 }
 0xc88   :  { %v3934_v40 = vpop.eup %3933 }
 0xc89   :  { %3937 = vtanh.f32 %v2454_v25  ;;  %v2457_v30 = vadd.f32 %v2453_v14, %v5069_v10  ;;  %v2452_v34 = vmul.f32 %v3934_v40, %v2414_v26 }
 0xc8b   :  { %3939 = vtanh.f32 %v2457_v30  ;;  %v2456_v41 = vadd.f32 %v2452_v34, %v5070_v17 }
 0xc8d   :  { %3941 = vtanh.f32 %v2456_v41  ;;  %v5076_v41 = vld [vmem:[#allocation24_spill] sm:$0xff] }
 0xc94   :  { %v3936_v9 = vpop.eup %3935 }
 0xc95   :  { %v2463_v33 = vsub.f32 %v4872_v46, %v3936_v9 }
 0xc96   :  { %v3938_v49 = vpop.eup %3937 }
 0xc97   :  { %2472 = vrot.lane.b32.xlu1 %v2463_v33, %s3977_s13  ;;  %v2462_v55 = vsub.f32 %v4870_v0, %v3938_v49 }
 0xc98   :  { %v3940_v6 = vpop.eup %3939 }
 0xc99   :  { %2470 = vrot.lane.b32.xlu0 %v2462_v55, %s3977_s13  ;;  %v2465_v63 = vsub.f32 %v4886_v53, %v3940_v6 }
 0xc9a   :  { %v3942_v23 = vpop.eup %3941 }
 0xc9b   :  { %2476 = vrot.lane.b32.xlu1 %v2465_v63, %s3977_s13  ;;  %v2464_v59 = vsub.f32 %v4882_v56, %v3942_v23 }
 0xc9d   :  { %2474 = vrot.lane.b32.xlu0 %v2464_v59, %s3977_s13  ;;  %v5078_v59 = vld [vmem:[#allocation26_spill] sm:$0xff] }
 0xd09   :  { %v2473_v37 = vpop.permute.xlu1 %2472 }
 0xd0a   :  { %v2483_v13 = vmul.f32 %v3928_v7, %v2473_v37 }
 0xd0b   :  { %v2471_v46 = vpop.permute.xlu0 %2470 }
 0xd0c   :  { %v2482_v12 = vmul.f32 %v3930_v47, %v2471_v46  ;;  %2492 = vrot.lane.b32.xlu1 %v2483_v13, %s3978_s14  ;;  %v2775_v13 = vld [vmem:[%s5026_s9 + $0x18] sm:$0xff]  ;;  %v2774_v46 = vld [vmem:[%s5026_s9 + $0x10] sm:$0xff] }
 0xd0d   :  { %v2477_v51 = vpop.permute.xlu1 %2476  ;;  %3744 = vmatprep.subr.mxu0 %v2775_v13 }
 0xd0e   :  { %v2485_v0 = vmul.f32 %v3932_v22, %v2477_v51  ;;  %2490 = vrot.lane.b32.xlu0 %v2482_v12, %s3978_s14 }
 0xd0f   :  { %v2475_v31 = vpop.permute.xlu0 %2474 }
 0xd10   :  { %v2484_v62 = vmul.f32 %v3934_v40, %v2475_v31  ;;  %2496 = vrot.lane.b32.xlu1 %v2485_v0, %s3978_s14  ;;  %v5075_v40 = vld [vmem:[#allocation23_spill] sm:$0xff] }
 0xd12   :  { %2494 = vrot.lane.b32.xlu0 %v2484_v62, %s3978_s14 }
 0xd7e   :  { %v2493_v53 = vpop.permute.xlu1 %2492 }
 0xd7f   :  { %v4934_v11 = vadd.f32 %v3936_v9, %v2493_v53 }
 0xd80   :  { %v2491_v56 = vpop.permute.xlu0 %2490 }
 0xd81   :  { %v4932_v24 = vadd.f32 %v3938_v49, %v2491_v56 }
 0xd82   :  { %v2497_v48 = vpop.permute.xlu1 %2496 }
 0xd83   :  { %3724 = vmatprep.mubr.msk.f32.mxu0 %vm652_vm2, %v4932_v24  ;;  %3738 = vmatprep.mubr.msk.f32.mxu1 %vm652_vm2, %v4932_v24  ;;  %v4946_v15 = vadd.f32 %v3940_v6, %v2497_v48  ;;  %v5077_v6 = vld [vmem:[#allocation25_spill] sm:$0xff] }
 0xd84   :  { %3725 = vmatmul.mubr.msk.f32.vlgmr.msra.gmra.mxu0 %vm652_vm2, %v4934_v11  ;;  %3739 = vmatmul.mubr.msk.f32.vlgmr.msra.gmra.mxu1 %vm652_vm2, %v4934_v11  ;;  %v2495_v38 = vpop.permute.xlu0 %2494 }
 0xd85   :  { %v4944_v52 = vadd.f32 %v3942_v23, %v2495_v38  ;;  %3745 = vmatpush3.msra.mxu0 %v2775_v13 }
 0xd86   :  { %3746 = vmatprep.subr.mxu0 %v2774_v46 }
 0xd87   :  { %3727 = vmatprep.mubr.msk.f32.mxu0 %vm652_vm2, %v4944_v52  ;;  %3741 = vmatprep.mubr.msk.f32.mxu1 %vm652_vm2, %v4944_v52 }
 0xd88   :  { %3728 = vmatmul.mubr.msk.f32.gmra.mxu0 %vm652_vm2, %v4946_v15  ;;  %3742 = vmatmul.mubr.msk.f32.gmra.mxu1 %vm652_vm2, %v4946_v15 }
 0xd89   :  { %3747 = vmatpush3.msra.mxu0 %v2774_v46 }
 0xe44   :  { %v3726_v5 = vpop.f32.mrf.mxu0  ;;  %v3740_v45 = vpop.f32.mrf.mxu1 }
 0xe45   :  { %v2689_v42 = vadd.f32 %v3726_v5, %v5071_v54  ;;  %v2675_v29 = vadd.f32 %v4848_v3, %v3740_v45 }
 0xe46   :  { %v2584_v57 = vpop.f32.mrf.mxu0  ;;  %v2669_v28 = vpop.f32.mrf.mxu1 }
 0xe47   :  { %v3199_v8 = vmul.f32 -1.442695, %v2689_v42  ;;  %v2688_v2 = vadd.f32 %v2584_v57, %v5072_v16  ;;  %v2670_v25 = vadd.f32 %v4848_v3, %v2669_v28 }
 0xe48   :  { %v3729_v21 = vpop.f32.mrf.mxu0  ;;  %v3743_v60 = vpop.f32.mrf.mxu1 }
 0xe49   :  { %3943 = vpow2.f32 %v3199_v8  ;;  %v3198_v58 = vmul.f32 -1.442695, %v2688_v2  ;;  %v2691_v4 = vadd.f32 %v3729_v21, %v5073_v39  ;;  %v2685_v34 = vadd.f32 %v4848_v3, %v3743_v60 }
 0xe4a   :  { %v2594_v36 = vpop.f32.mrf.mxu0  ;;  %v2679_v26 = vpop.f32.mrf.mxu1 }
 0xe4b   :  { %3945 = vpow2.f32 %v3198_v58  ;;  %v3201_v32 = vmul.f32 -1.442695, %v2691_v4  ;;  %v2690_v19 = vadd.f32 %v2594_v36, %v5074_v18  ;;  %v2680_v49 = vadd.f32 %v4848_v3, %v2679_v26 }
 0xe4d   :  { %3947 = vpow2.f32 %v3201_v32  ;;  %v3200_v61 = vmul.f32 -1.442695, %v2690_v19  ;;  %v2873_v32 = vld [vmem:[%s5027_s8] sm:$0xff] }
 0xe4e   :  { %3762 = vmatprep.mubr.msk.f32.mxu1 %vm2875_vm3, %v2873_v32 }
 0xe4f   :  { %3949 = vpow2.f32 %v3200_v61  ;;  %v2874_v61 = vld [vmem:[%s5027_s8 + $0x8] sm:$0xff] }
 0xe56   :  { %v3944_v27 = vpop.eup %3943 }
 0xe57   :  { %v2705_v20 = vadd.f32 1.0, %v3944_v27 }
 0xe58   :  { %v3946_v43 = vpop.eup %3945 }
 0xe59   :  { %3951 = vrcp.f32 %v2705_v20  ;;  %v2704_v7 = vadd.f32 1.0, %v3946_v43 }
 0xe5a   :  { %v3948_v35 = vpop.eup %3947 }
 0xe5b   :  { %3953 = vrcp.f32 %v2704_v7  ;;  %v2707_v1 = vadd.f32 1.0, %v3948_v35 }
 0xe5c   :  { %v3950_v47 = vpop.eup %3949 }
 0xe5d   :  { %3955 = vrcp.f32 %v2707_v1  ;;  %v2706_v44 = vadd.f32 1.0, %v3950_v47 }
 0xe5f   :  { %3957 = vrcp.f32 %v2706_v44 }
 0xe66   :  { %v3952_v22 = vpop.eup %3951 }
 0xe67   :  { %v2717_v50 = vmul.f32 %v3952_v22, %v2675_v29 }
 0xe68   :  { %v3954_v14 = vpop.eup %3953 }
 0xe69   :  { %v2721_v10 = vadd.f32 %v2717_v50, %v5075_v40  ;;  %v2716_v30 = vmul.f32 %v3954_v14, %v2670_v25 }
 0xe6a   :  { %v3956_v17 = vpop.eup %3955 }
 0xe6b   :  { %3959 = vtanh.f32 %v2721_v10  ;;  %v2720_v9 = vadd.f32 %v2716_v30, %v5076_v41  ;;  %v2719_v33 = vmul.f32 %v3956_v17, %v2685_v34 }
 0xe6c   :  { %v3958_v55 = vpop.eup %3957 }
 0xe6d   :  { %3961 = vtanh.f32 %v2720_v9  ;;  %v2723_v63 = vadd.f32 %v2719_v33, %v5077_v6  ;;  %v2718_v23 = vmul.f32 %v3958_v55, %v2680_v49 }
 0xe6f   :  { %3963 = vtanh.f32 %v2723_v63  ;;  %v2722_v37 = vadd.f32 %v2718_v23, %v5078_v59 }
 0xe71   :  { %3965 = vtanh.f32 %v2722_v37 }
 0xe78   :  { %v3960_v12 = vpop.eup %3959 }
 0xe79   :  { %v2729_v3 = vsub.f32 %v4934_v11, %v3960_v12  ;;  %v2773_v11 = vld [vmem:[%s5026_s9 + $0x8] sm:$0xff] }
 0xe7a   :  { %v3962_v51 = vpop.eup %3961  ;;  %3748 = vmatprep.subr.mxu0 %v2773_v11 }
 0xe7b   :  { %2738 = vrot.lane.b32.xlu1 %v2729_v3, %s3977_s13  ;;  %v2728_v0 = vsub.f32 %v4932_v24, %v3962_v51  ;;  %3749 = vmatpush3.msra.mxu0 %v2773_v11  ;;  %v2772_v24 = vld [vmem:[%s5026_s9] sm:$0xff] }
 0xe7c   :  { %v3964_v31 = vpop.eup %3963  ;;  %3750 = vmatprep.subr.mxu0 %v2772_v24 }
 0xe7d   :  { %2736 = vrot.lane.b32.xlu0 %v2728_v0, %s3977_s13  ;;  %v2731_v62 = vsub.f32 %v4946_v15, %v3964_v31  ;;  %3751 = vmatpush3.msra.mxu0 %v2772_v24 }
 0xe7e   :  { %v3966_v53 = vpop.eup %3965 }
 0xe7f   :  { %2742 = vrot.lane.b32.xlu1 %v2731_v62, %s3977_s13  ;;  %v2730_v56 = vsub.f32 %v4944_v52, %v3966_v53 }
 0xe81   :  { %2740 = vrot.lane.b32.xlu0 %v2730_v56, %s3977_s13 }
 0xeed   :  { %v2739_v48 = vpop.permute.xlu1 %2738 }
 0xeee   :  { %v2749_v38 = vmul.f32 %v3952_v22, %v2739_v48 }
 0xeef   :  { %v2737_v15 = vpop.permute.xlu0 %2736 }
 0xef0   :  { %v2748_v5 = vmul.f32 %v3954_v14, %v2737_v15  ;;  %2758 = vrot.lane.b32.xlu1 %v2749_v38, %s3978_s14 }
 0xef1   :  { %v2743_v52 = vpop.permute.xlu1 %2742 }
 0xef2   :  { %v2751_v54 = vmul.f32 %v3956_v17, %v2743_v52  ;;  %2756 = vrot.lane.b32.xlu0 %v2748_v5, %s3978_s14 }
 0xef3   :  { %v2741_v42 = vpop.permute.xlu0 %2740 }
 0xef4   :  { %v2750_v57 = vmul.f32 %v3958_v55, %v2741_v42  ;;  %2762 = vrot.lane.b32.xlu1 %v2751_v54, %s3978_s14 }
 0xef6   :  { %2760 = vrot.lane.b32.xlu0 %v2750_v57, %s3978_s14 }
 0xf62   :  { %v2759_v8 = vpop.permute.xlu1 %2758 }
 0xf63   :  { %v2769_v21 = vadd.f32 %v3960_v12, %v2759_v8 }
 0xf64   :  { %v2757_v16 = vpop.permute.xlu0 %2756 }
 0xf65   :  { %v2768_v2 = vadd.f32 %v3962_v51, %v2757_v16 }
 0xf66   :  { %v2763_v58 = vpop.permute.xlu1 %2762 }
 0xf67   :  { %3752 = vmatprep.mubr.msk.f32.mxu0 %vm652_vm2, %v2768_v2  ;;  %v2771_v36 = vadd.f32 %v3964_v31, %v2763_v58 }
 0xf68   :  { %3753 = vmatmul.mubr.msk.f32.vlgmr.msra.gmra.mxu0 %vm652_vm2, %v2769_v21  ;;  %v2761_v39 = vpop.permute.xlu0 %2760 }
 0xf69   :  { %v2770_v4 = vadd.f32 %v3966_v53, %v2761_v39 }
 0xf6b   :  { %3755 = vmatprep.mubr.msk.f32.mxu0 %vm652_vm2, %v2770_v4 }
 0xf6c   :  { %3756 = vmatmul.mubr.msk.f32.gmra.mxu0 %vm652_vm2, %v2771_v36 }
0x1028   :  { %v3754_v18 = vpop.f32.mrf.mxu0 }
0x1029   :  { %3758 = vmatprep.subr.mxu1 %v3754_v18 }
0x102a   :  { %v2854_v19 = vpop.f32.mrf.mxu0  ;;  %3759 = vmatpush3.msra.mxu1 %v3754_v18 }
0x102b   :  { %3760 = vmatprep.subr.mxu1 %v2854_v19 }
0x102c   :  { %v3757_v27 = vpop.f32.mrf.mxu0  ;;  %3761 = vmatpush3.msra.mxu1 %v2854_v19 }
0x102d   :  { %3765 = vmatprep.subr.mxu1 %v3757_v27  ;;  %3763 = vmatmul.mubr.msk.f32.vlgmr.msra.gmra.mxu1 %vm2875_vm3, %v2874_v61 }
0x102e   :  { %v2864_v20 = vpop.f32.mrf.mxu0  ;;  %3766 = vmatpush3.msra.mxu1 %v3757_v27  ;;  %3769 = vmatprep.mubr.msk.f32.mxu1 %vm2875_vm3, %v2873_v32 }
0x102f   :  { %3767 = vmatprep.subr.mxu1 %v2864_v20 }
0x1030   :  { %3768 = vmatpush3.msra.mxu1 %v2864_v20 }
0x1031   :  { %3770 = vmatmul.mubr.msk.f32.vlgmr.msra.gmra.mxu1 %vm2875_vm3, %v2874_v61 }
0x10ed   :  { %v3764_v43 = vpop.f32.mrf.mxu1 }
0x10ee   :  { %v2958_v7 = vmax.f32 %v3764_v43, 0.0 }
0x10ef   :  { %v2948_v35 = vpop.f32.mrf.mxu1 }
0x10f0   :  { %2961 = vst.msk [vmem:[%s5028_s10 + $0x8] sm:$0xff] %vm2959_vm4, %v2958_v7  ;;  %v2957_v1 = vmax.f32 %v2948_v35, 0.0 }
0x10f1   :  { %v3771_v47 = vpop.f32.mrf.mxu1 }
0x10f2   :  { %2960 = vst.msk [vmem:[%s5028_s10] sm:$0xff] %vm2959_vm4, %v2957_v1  ;;  %v3038_v45 = vmax.f32 %v3771_v47, 0.0 }
0x10f3   :  { %v3028_v44 = vpop.f32.mrf.mxu1 }
0x10f4   :  { %3040 = vst.msk [vmem:[%s5028_s10 + $0x18] sm:$0xff] %vm2959_vm4, %v3038_v45  ;;  %v3037_v28 = vmax.f32 %v3028_v44, 0.0 }
0x10f6   :  { %3039 = vst.msk [vmem:[%s5028_s10 + $0x10] sm:$0xff] %vm2959_vm4, %v3037_v28 }

</bundles_post_ra>
